<compile_context>
chip_gen: v7x
topology: tpu7x:2x2x1
jax: 0.10.0
libtpu: 0.0.40
codegen_flags: <defaults>
</compile_context>

<pallas_src>
import functools

import jax
import jax.numpy as jnp
import numpy as np
from jax.experimental import pallas as pl
from jax.experimental.pallas import tpu as pltpu


# --------------------------------------------------------------------------
# Fused kernel
# --------------------------------------------------------------------------
def make_rrnet_kernel(num_stages, nl, batch_chunk):
    Bc = batch_chunk

    def _taps(h, Lc):
        """+-1 row shifts within each length-Lc segment (zero padded per segment).

        h is the batch-flattened activation (Bc*Lc rows, C lanes); row
        r = b*Lc + l.  The mask keeps the k=3 zero padding from leaking across
        batch boundaries.
        """
        N, C = h.shape
        zrow = jnp.zeros((1, C), jnp.float32)
        hp = jnp.concatenate([zrow, h[:N - 1, :]], axis=0)    # row r -> h[r-1]
        hn = jnp.concatenate([h[1:, :], zrow], axis=0)        # row r -> h[r+1]
        if Bc > 1:
            row = jax.lax.broadcasted_iota(jnp.int32, (N, C), 0)
            if (Lc & (Lc - 1)) == 0:                          # power of two
                pos = jnp.bitwise_and(row, Lc - 1)
            else:
                pos = row % Lc
            hp = jnp.where(pos == 0, 0.0, hp)
            hn = jnp.where(pos == Lc - 1, 0.0, hn)
        return hp, hn

    def kernel(*refs):
        i = 0
        x_ref = refs[i]; i += 1
        stage_w = []
        for _ in range(num_stages):
            stage_w.append(refs[i:i + 2]); i += 2
        fc1_ref, fc2_ref, wms_ref = refs[i:i + 3]; i += 3
        out_ref = refs[i]; i += 1
        z_scr = refs[i:i + num_stages]

        # Channels-last, batch flattened onto rows: (Bc*L, 1).
        h = x_ref[0]
        for s in range(num_stages):
            w1_ref, w2_ref = stage_w[s]
            zs = z_scr[s]
            N = h.shape[0]
            Lc = N // Bc
            ones_col = jnp.ones((N, 1), jnp.float32)

            # Conv1 (k=3, pad=1) as one im2col matmul, bias folded (ones col).
            hp, hn = _taps(h, Lc)
            x1 = jnp.concatenate([hp, h, hn, ones_col], axis=1)
            g = jnp.maximum(
                jnp.dot(x1, w1_ref[...], preferred_element_type=jnp.float32),
                0.0)

            # Conv2 + residual 1x1 conv + (b2+bd) fused into ONE matmul.
            gp, gn = _taps(g, Lc)
            x2 = jnp.concatenate([gp, g, gn, h, ones_col], axis=1)
            zs[...] = jnp.dot(x2, w2_ref[...],
                              preferred_element_type=jnp.float32)

            if s + 1 < num_stages:
                # AvgPool1d(2): pair-add of even/odd rows (sublane-strided reads).
                Nh = N // 2
                h = 0.5 * (zs[pl.ds(0, Nh, stride=2), :]
                           + zs[pl.ds(1, Nh, stride=2), :])

        # Last-stage AvgPool + torch.relu + (l, c)-order flatten, fused into
        # strided reads over the whole batch chunk; ones column folds fc1 bias.
        zs = z_scr[num_stages - 1]
        Lf = zs.shape[0] // (2 * Bc)                 # spatial length after pool
        pieces = []
        for m in range(Lf):
            p = (zs[pl.ds(2 * m, Bc, stride=2 * Lf), :]
                 + zs[pl.ds(2 * m + 1, Bc, stride=2 * Lf), :])
            pieces.append(jnp.maximum(0.5 * p, 0.0))
        ones_b = jnp.ones((Bc, 1), jnp.float32)
        flat = jnp.concatenate(pieces + [ones_b], axis=1)     # (Bc, F+1)

        # MLP head (biases folded via ones columns; Dropout = identity).
        h1 = jnp.maximum(
            jnp.dot(flat, fc1_ref[...], preferred_element_type=jnp.float32),
            0.0)
        h1 = jnp.concatenate([h1, ones_b], axis=1)
        h2 = jnp.maximum(
            jnp.dot(h1, fc2_ref[...], preferred_element_type=jnp.float32),
            0.0)
        h2 = jnp.concatenate([h2, ones_b], axis=1)
        raw = jnp.dot(h2, wms_ref[...],
                      preferred_element_type=jnp.float32)     # (Bc, [mu|sigma])
        sp = jnp.where(raw > 20.0, raw,
                       jnp.log1p(jnp.exp(jnp.minimum(raw, 20.0))))
        col = jax.lax.broadcasted_iota(jnp.int32, raw.shape, 1)
        out_ref[0] = jnp.where(col < nl, raw, sp)    # softplus only on sigma

    return kernel


# --------------------------------------------------------------------------
# Pallas wrapper
# --------------------------------------------------------------------------
def _const_index_map(ndim):
    zeros = (0,) * ndim
    return lambda b: zeros


def rrnet_pallas(x, kp, *, batch_chunk=None):
    B, L = x.shape
    stages = kp['stages']
    num_stages = len(stages)
    assert L % (2 ** num_stages) == 0
    nl = kp['wms_aug'].shape[1] // 2

    Bc = batch_chunk if batch_chunk is not None else min(B, 8)
    assert B % Bc == 0
    nchunks = B // Bc

    # Batch chunk flattened onto rows: (nchunks, Bc*L, 1), channels-last.
    x3d = x.reshape(nchunks, Bc * L, 1)

    inputs = [x3d]
    in_specs = [pl.BlockSpec((1, Bc * L, 1), lambda b: (b, 0, 0))]
    for sp_ in stages:
        for name in ('w1_aug', 'w2_aug'):
            arr = sp_[name]
            inputs.append(arr)
            in_specs.append(pl.BlockSpec(arr.shape, _const_index_map(arr.ndim)))
    for name in ('fc1_aug', 'fc2_aug', 'wms_aug'):
        arr = kp[name]
        inputs.append(arr)
        in_specs.append(pl.BlockSpec(arr.shape, _const_index_map(arr.ndim)))

    # Per-stage scratch holding the ResBlock output before AvgPool.
    scratch = []
    Lc = L
    for sp_ in stages:
        cout = sp_['w1_aug'].shape[1]
        scratch.append(pltpu.VMEM((Bc * Lc, cout), jnp.float32))
        Lc //= 2

    out = pl.pallas_call(
        make_rrnet_kernel(num_stages, nl, Bc),
        out_shape=jax.ShapeDtypeStruct((nchunks, Bc, 2 * nl), jnp.float32),
        grid=(nchunks,),
        in_specs=in_specs,
        out_specs=pl.BlockSpec((1, Bc, 2 * nl), lambda b: (b, 0, 0)),
        scratch_shapes=scratch,
        compiler_params=pltpu.CompilerParams(
            dimension_semantics=("parallel",)),
    )(*inputs)
    out = out.reshape(B, 2 * nl)
    return out[:, :nl], out[:, nl:]


# --------------------------------------------------------------------------
# One-time parameter preprocessing (hoisted out of the forward pass)
# --------------------------------------------------------------------------
def preprocess_params(params):
    kp = {'stages': []}
    for sp in params['stages']:
        Cout, Cin, _ = sp['w1'].shape
        # im2col weights, tap-major: w_mat[k*Cin + ci, co] = w[co, ci, k]
        w1_mat = jnp.transpose(sp['w1'], (2, 1, 0)).reshape(3 * Cin, Cout)
        w2_mat = jnp.transpose(sp['w2'], (2, 1, 0)).reshape(3 * Cout, Cout)
        wd_mat = sp['wd'][:, :, 0].T                      # (Cin, Cout)
        # Bias folded in as the last weight row (ones column on the activation).
        w1_aug = jnp.concatenate([w1_mat, sp['b1'].reshape(1, Cout)], axis=0)
        # Residual 1x1 conv + combined bias stacked below the conv2 taps.
        w2_aug = jnp.concatenate(
            [w2_mat, wd_mat, (sp['b2'] + sp['bd']).reshape(1, Cout)], axis=0)
        kp['stages'].append(dict(w1_aug=w1_aug, w2_aug=w2_aug))

    # fc1 weight columns permuted from PyTorch's (c, l) flatten order to the
    # kernel's (l, c) channels-last flatten order; bias folded as last row.
    nfc1, F = params['fc1_w'].shape
    C_last = params['stages'][-1]['w1'].shape[0]
    Lf = F // C_last
    fc1_perm = params['fc1_w'].reshape(nfc1, C_last, Lf)
    fc1_perm = jnp.transpose(fc1_perm, (0, 2, 1)).reshape(nfc1, F)
    kp['fc1_aug'] = jnp.concatenate(
        [fc1_perm.T, params['fc1_b'].reshape(1, -1)], axis=0)      # (F+1, 256)
    kp['fc2_aug'] = jnp.concatenate(
        [params['fc2_w'].T, params['fc2_b'].reshape(1, -1)], axis=0)  # (257,128)
    # mu and sigma heads packed lane-contiguously: [mu | sigma]; bias last row.
    wms = jnp.concatenate([params['mu_w'].T, params['sigma_w'].T], axis=1)
    bms = jnp.concatenate([params['mu_b'], params['sigma_b']]).reshape(1, -1)
    kp['wms_aug'] = jnp.concatenate([wms, bms], axis=0)            # (129, 2*nl)
    return kp


# --------------------------------------------------------------------------
# Pure-JAX reference (correctness check)
# --------------------------------------------------------------------------
def _conv1d_ref(x, w, b, pad):
    out = jax.lax.conv_general_dilated(
        x, w, window_strides=(1,), padding=[(pad, pad)],
        dimension_numbers=('NCH', 'OIH', 'NCH'))
    return out + b[None, :, None]


def _resblock_ref(x, sp):
    h = jax.nn.relu(_conv1d_ref(x, sp['w1'], sp['b1'], 1))
    y = _conv1d_ref(h, sp['w2'], sp['b2'], 1)
    d = _conv1d_ref(x, sp['wd'], sp['bd'], 0)
    z = y + d
    B, C, L = z.shape
    return z.reshape(B, C, L // 2, 2).mean(-1)


def rrnet_ref(x, params):
    B, L = x.shape
    h = x.reshape(B, 1, L)
    for sp in params['stages']:
        h = _resblock_ref(h, sp)
    h = jax.nn.relu(h).reshape(B, -1)
    h = jax.nn.relu(h @ params['fc1_w'].T + params['fc1_b'])
    h = jax.nn.relu(h @ params['fc2_w'].T + params['fc2_b'])
    mu = h @ params['mu_w'].T + params['mu_b']
    sg = jax.nn.softplus(h @ params['sigma_w'].T + params['sigma_b'])
    return mu, sg


# --------------------------------------------------------------------------
# Deterministic parameter init (PyTorch-style uniform fan-in bounds)
# --------------------------------------------------------------------------
def init_params(key, len_spectrum, planes=(1, 4, 8, 16), num_label=3):
    keys = list(jax.random.split(key, 32))
    it = iter(keys)

    def u(shape, fan_in):
        bound = 1.0 / np.sqrt(fan_in)
        return jax.random.uniform(next(it), shape, jnp.float32, -bound, bound)

    stages = []
    for i in range(len(planes) - 1):
        cin, cout = planes[i], planes[i + 1]
        stages.append(dict(
            w1=u((cout, cin, 3), cin * 3), b1=u((cout,), cin * 3),
            w2=u((cout, cout, 3), cout * 3), b2=u((cout,), cout * 3),
            wd=u((cout, cin, 1), cin), bd=u((cout,), cin),
        ))
    F = planes[-1] * (len_spectrum // 2 ** (len(planes) - 1))
    return dict(
        stages=stages,
        fc1_w=u((256, F), F), fc1_b=u((256,), F),
        fc2_w=u((128, 256), 256), fc2_b=u((128,), 256),
        mu_w=u((num_label, 128), 128), mu_b=u((num_label,), 128),
        sigma_w=u((num_label, 128), 128), sigma_b=u((num_label,), 128),
    )


# --------------------------------------------------------------------------
if __name__ == "__main__":
    B = 4
    BATCH_CHUNK = 2           # 2 chunks -> both TensorCores on v7x get work
    LEN_SPECTRUM = 64         # small len_spectrum; divisible by num_rnn_sequence
    NUM_RNN_SEQ = 8           # mode='raw': len_spectrum % num_rnn_sequence == 0
    assert LEN_SPECTRUM % NUM_RNN_SEQ == 0
    assert LEN_SPECTRUM % 8 == 0   # 3 AvgPool1d(2) stages
    assert B % BATCH_CHUNK == 0

    key = jax.random.PRNGKey(0)
    kp_key, kx = jax.random.split(key)
    params = init_params(kp_key, LEN_SPECTRUM)
    x = jax.random.normal(kx, (B, LEN_SPECTRUM), jnp.float32)

    kparams = preprocess_params(params)          # one-time layout preprocessing
    fwd = jax.jit(functools.partial(rrnet_pallas, batch_chunk=BATCH_CHUNK))

    mu, sigma = fwd(x, kparams)
    jax.block_until_ready((mu, sigma))

    mu_r, sg_r = rrnet_ref(x, params)
    np.testing.assert_allclose(np.asarray(mu), np.asarray(mu_r),
                               rtol=1e-3, atol=1e-3)
    np.testing.assert_allclose(np.asarray(sigma), np.asarray(sg_r),
                               rtol=1e-3, atol=1e-3)

    print("KERNEL_OK")
</pallas_src>

<mosaic_0001>
module attributes {stable_mosaic.version = 11 : i64} {
  func.func @kernel(%arg0: i32, %arg1: memref<1x128x1xf32, #tpu.memory_space<vmem>>, %arg2: memref<4x4xf32, #tpu.memory_space<vmem>>, %arg3: memref<14x4xf32, #tpu.memory_space<vmem>>, %arg4: memref<13x8xf32, #tpu.memory_space<vmem>>, %arg5: memref<29x8xf32, #tpu.memory_space<vmem>>, %arg6: memref<25x16xf32, #tpu.memory_space<vmem>>, %arg7: memref<57x16xf32, #tpu.memory_space<vmem>>, %arg8: memref<129x256xf32, #tpu.memory_space<vmem>>, %arg9: memref<257x128xf32, #tpu.memory_space<vmem>>, %arg10: memref<129x6xf32, #tpu.memory_space<vmem>>, %arg11: memref<1x2x6xf32, #tpu.memory_space<vmem>>, %arg12: memref<128x4xf32, #tpu.memory_space<vmem>>, %arg13: memref<64x8xf32, #tpu.memory_space<vmem>>, %arg14: memref<32x16xf32, #tpu.memory_space<vmem>>) attributes {dimension_semantics = [#tpu.dimension_semantics<parallel>], iteration_bounds = array<i64: 2>, scalar_prefetch = 0 : i64, scratch_operands = 3 : i64, tpu.core_type = #tpu.core_type<tc>, window_params = [{transform_indices = @transform_0, window_bounds = array<i64: 1, 128, 1>}, {pipeline_mode = #tpu.pipeline_mode<synchronous>, transform_indices = @transform_1, window_bounds = array<i64: 4, 4>}, {pipeline_mode = #tpu.pipeline_mode<synchronous>, transform_indices = @transform_2, window_bounds = array<i64: 14, 4>}, {pipeline_mode = #tpu.pipeline_mode<synchronous>, transform_indices = @transform_3, window_bounds = array<i64: 13, 8>}, {pipeline_mode = #tpu.pipeline_mode<synchronous>, transform_indices = @transform_4, window_bounds = array<i64: 29, 8>}, {pipeline_mode = #tpu.pipeline_mode<synchronous>, transform_indices = @transform_5, window_bounds = array<i64: 25, 16>}, {pipeline_mode = #tpu.pipeline_mode<synchronous>, transform_indices = @transform_6, window_bounds = array<i64: 57, 16>}, {pipeline_mode = #tpu.pipeline_mode<synchronous>, transform_indices = @transform_7, window_bounds = array<i64: 129, 256>}, {pipeline_mode = #tpu.pipeline_mode<synchronous>, transform_indices = @transform_8, window_bounds = array<i64: 257, 128>}, {pipeline_mode = #tpu.pipeline_mode<synchronous>, transform_indices = @transform_9, window_bounds = array<i64: 129, 6>}, {transform_indices = @transform_10, window_bounds = array<i64: 1, 2, 6>}]} {
    %c0 = arith.constant 0 : index
    %c0_0 = arith.constant 0 : index
    %c0_1 = arith.constant 0 : index
    %0 = vector.load %arg1[%c0, %c0_0, %c0_1] : memref<1x128x1xf32, #tpu.memory_space<vmem>>, vector<1x128x1xf32>
    %1 = vector.shape_cast %0 : vector<1x128x1xf32> to vector<128x1xf32>
    %cst = arith.constant 1.000000e+00 : f32
    %2 = vector.broadcast %cst : f32 to vector<128x1xf32>
    %cst_2 = arith.constant 0.000000e+00 : f32
    %3 = vector.broadcast %cst_2 : f32 to vector<1x1xf32>
    %4 = vector.extract_strided_slice %1 {offsets = [0, 0], sizes = [127, 1], strides = [1, 1]} : vector<128x1xf32> to vector<127x1xf32>
    %5 = tpu.concatenate %3, %4 in 0 : vector<1x1xf32>, vector<127x1xf32> -> vector<128x1xf32>
    %6 = vector.extract_strided_slice %1 {offsets = [1, 0], sizes = [127, 1], strides = [1, 1]} : vector<128x1xf32> to vector<127x1xf32>
    %7 = tpu.concatenate %6, %3 in 0 : vector<127x1xf32>, vector<1x1xf32> -> vector<128x1xf32>
    %8 = tpu.iota {dimensions = array<i32: 0>} : vector<128x1xi32>
    %c63_i32 = arith.constant 63 : i32
    %9 = vector.broadcast %c63_i32 : i32 to vector<128x1xi32>
    %10 = arith.andi %8, %9 : vector<128x1xi32>
    %c0_i32 = arith.constant 0 : i32
    %11 = vector.broadcast %c0_i32 : i32 to vector<128x1xi32>
    %12 = arith.cmpi eq, %10, %11 : vector<128x1xi32>
    %cst_3 = arith.constant 0.000000e+00 : f32
    %13 = vector.broadcast %cst_3 : f32 to vector<128x1xf32>
    %14 = arith.select %12, %13, %5 : vector<128x1xi1>, vector<128x1xf32>
    %c63_i32_4 = arith.constant 63 : i32
    %15 = vector.broadcast %c63_i32_4 : i32 to vector<128x1xi32>
    %16 = arith.cmpi eq, %10, %15 : vector<128x1xi32>
    %cst_5 = arith.constant 0.000000e+00 : f32
    %17 = vector.broadcast %cst_5 : f32 to vector<128x1xf32>
    %18 = arith.select %16, %17, %7 : vector<128x1xi1>, vector<128x1xf32>
    %19 = tpu.concatenate %14, %1, %18, %2 in 1 : vector<128x1xf32>, vector<128x1xf32>, vector<128x1xf32>, vector<128x1xf32> -> vector<128x4xf32>
    %c0_6 = arith.constant 0 : index
    %c0_7 = arith.constant 0 : index
    %20 = vector.load %arg2[%c0_6, %c0_7] : memref<4x4xf32, #tpu.memory_space<vmem>>, vector<4x4xf32>
    %cst_8 = arith.constant dense<0.000000e+00> : vector<128x4xf32>
    %21 = tpu.matmul %19, %20, %cst_8 {dimension_numbers = #tpu.dot_dimension_numbers<[1], [0], [0], [1], [0, 0, 1, 1], [], []>} : vector<128x4xf32>, vector<4x4xf32>, vector<128x4xf32> -> vector<128x4xf32>
    %cst_9 = arith.constant 0.000000e+00 : f32
    %22 = vector.broadcast %cst_9 : f32 to vector<128x4xf32>
    %23 = arith.maximumf %21, %22 : vector<128x4xf32>
    %cst_10 = arith.constant 0.000000e+00 : f32
    %24 = vector.broadcast %cst_10 : f32 to vector<1x4xf32>
    %25 = vector.extract_strided_slice %23 {offsets = [0, 0], sizes = [127, 4], strides = [1, 1]} : vector<128x4xf32> to vector<127x4xf32>
    %26 = tpu.concatenate %24, %25 in 0 : vector<1x4xf32>, vector<127x4xf32> -> vector<128x4xf32>
    %27 = vector.extract_strided_slice %23 {offsets = [1, 0], sizes = [127, 4], strides = [1, 1]} : vector<128x4xf32> to vector<127x4xf32>
    %28 = tpu.concatenate %27, %24 in 0 : vector<127x4xf32>, vector<1x4xf32> -> vector<128x4xf32>
    %29 = tpu.iota {dimensions = array<i32: 0>} : vector<128x4xi32>
    %c63_i32_11 = arith.constant 63 : i32
    %30 = vector.broadcast %c63_i32_11 : i32 to vector<128x4xi32>
    %31 = arith.andi %29, %30 : vector<128x4xi32>
    %c0_i32_12 = arith.constant 0 : i32
    %32 = vector.broadcast %c0_i32_12 : i32 to vector<128x4xi32>
    %33 = arith.cmpi eq, %31, %32 : vector<128x4xi32>
    %cst_13 = arith.constant 0.000000e+00 : f32
    %34 = vector.broadcast %cst_13 : f32 to vector<128x4xf32>
    %35 = arith.select %33, %34, %26 : vector<128x4xi1>, vector<128x4xf32>
    %c63_i32_14 = arith.constant 63 : i32
    %36 = vector.broadcast %c63_i32_14 : i32 to vector<128x4xi32>
    %37 = arith.cmpi eq, %31, %36 : vector<128x4xi32>
    %cst_15 = arith.constant 0.000000e+00 : f32
    %38 = vector.broadcast %cst_15 : f32 to vector<128x4xf32>
    %39 = arith.select %37, %38, %28 : vector<128x4xi1>, vector<128x4xf32>
    %40 = tpu.concatenate %35, %23, %39, %1, %2 in 1 : vector<128x4xf32>, vector<128x4xf32>, vector<128x4xf32>, vector<128x1xf32>, vector<128x1xf32> -> vector<128x14xf32>
    %c0_16 = arith.constant 0 : index
    %c0_17 = arith.constant 0 : index
    %41 = vector.load %arg3[%c0_16, %c0_17] : memref<14x4xf32, #tpu.memory_space<vmem>>, vector<14x4xf32>
    %cst_18 = arith.constant dense<0.000000e+00> : vector<128x4xf32>
    %42 = tpu.matmul %40, %41, %cst_18 {dimension_numbers = #tpu.dot_dimension_numbers<[1], [0], [0], [1], [0, 0, 1, 1], [], []>} : vector<128x14xf32>, vector<14x4xf32>, vector<128x4xf32> -> vector<128x4xf32>
    %c0_19 = arith.constant 0 : index
    %c0_20 = arith.constant 0 : index
    %43 = vector.load %arg12[%c0_19, %c0_20] : memref<128x4xf32, #tpu.memory_space<vmem>>, vector<128x4xf32>
    tpu.vector_store %arg12[%c0_19, %c0_20], %42 {strides = array<i32>} : memref<128x4xf32, #tpu.memory_space<vmem>>, vector<128x4xf32>,
    %c0_21 = arith.constant 0 : index
    %c0_22 = arith.constant 0 : index
    %44 = tpu.strided_load %arg12[%c0_21, %c0_22] {strides = array<i32: 2, 1>} : memref<128x4xf32, #tpu.memory_space<vmem>>, vector<64x4xf32>
    %c1 = arith.constant 1 : index
    %c0_23 = arith.constant 0 : index
    %45 = tpu.strided_load %arg12[%c1, %c0_23] {strides = array<i32: 2, 1>} : memref<128x4xf32, #tpu.memory_space<vmem>>, vector<64x4xf32>
    %46 = arith.addf %44, %45 : vector<64x4xf32>
    %cst_24 = arith.constant 5.000000e-01 : f32
    %47 = vector.broadcast %cst_24 : f32 to vector<64x4xf32>
    %48 = arith.mulf %47, %46 : vector<64x4xf32>
    %cst_25 = arith.constant 1.000000e+00 : f32
    %49 = vector.broadcast %cst_25 : f32 to vector<64x1xf32>
    %cst_26 = arith.constant 0.000000e+00 : f32
    %50 = vector.broadcast %cst_26 : f32 to vector<1x4xf32>
    %51 = vector.extract_strided_slice %48 {offsets = [0, 0], sizes = [63, 4], strides = [1, 1]} : vector<64x4xf32> to vector<63x4xf32>
    %52 = tpu.concatenate %50, %51 in 0 : vector<1x4xf32>, vector<63x4xf32> -> vector<64x4xf32>
    %53 = vector.extract_strided_slice %48 {offsets = [1, 0], sizes = [63, 4], strides = [1, 1]} : vector<64x4xf32> to vector<63x4xf32>
    %54 = tpu.concatenate %53, %50 in 0 : vector<63x4xf32>, vector<1x4xf32> -> vector<64x4xf32>
    %55 = tpu.iota {dimensions = array<i32: 0>} : vector<64x4xi32>
    %c31_i32 = arith.constant 31 : i32
    %56 = vector.broadcast %c31_i32 : i32 to vector<64x4xi32>
    %57 = arith.andi %55, %56 : vector<64x4xi32>
    %c0_i32_27 = arith.constant 0 : i32
    %58 = vector.broadcast %c0_i32_27 : i32 to vector<64x4xi32>
    %59 = arith.cmpi eq, %57, %58 : vector<64x4xi32>
    %cst_28 = arith.constant 0.000000e+00 : f32
    %60 = vector.broadcast %cst_28 : f32 to vector<64x4xf32>
    %61 = arith.select %59, %60, %52 : vector<64x4xi1>, vector<64x4xf32>
    %c31_i32_29 = arith.constant 31 : i32
    %62 = vector.broadcast %c31_i32_29 : i32 to vector<64x4xi32>
    %63 = arith.cmpi eq, %57, %62 : vector<64x4xi32>
    %cst_30 = arith.constant 0.000000e+00 : f32
    %64 = vector.broadcast %cst_30 : f32 to vector<64x4xf32>
    %65 = arith.select %63, %64, %54 : vector<64x4xi1>, vector<64x4xf32>
    %66 = tpu.concatenate %61, %48, %65, %49 in 1 : vector<64x4xf32>, vector<64x4xf32>, vector<64x4xf32>, vector<64x1xf32> -> vector<64x13xf32>
    %c0_31 = arith.constant 0 : index
    %c0_32 = arith.constant 0 : index
    %67 = vector.load %arg4[%c0_31, %c0_32] : memref<13x8xf32, #tpu.memory_space<vmem>>, vector<13x8xf32>
    %cst_33 = arith.constant dense<0.000000e+00> : vector<64x8xf32>
    %68 = tpu.matmul %66, %67, %cst_33 {dimension_numbers = #tpu.dot_dimension_numbers<[1], [0], [0], [1], [0, 0, 1, 1], [], []>} : vector<64x13xf32>, vector<13x8xf32>, vector<64x8xf32> -> vector<64x8xf32>
    %cst_34 = arith.constant 0.000000e+00 : f32
    %69 = vector.broadcast %cst_34 : f32 to vector<64x8xf32>
    %70 = arith.maximumf %68, %69 : vector<64x8xf32>
    %cst_35 = arith.constant 0.000000e+00 : f32
    %71 = vector.broadcast %cst_35 : f32 to vector<1x8xf32>
    %72 = vector.extract_strided_slice %70 {offsets = [0, 0], sizes = [63, 8], strides = [1, 1]} : vector<64x8xf32> to vector<63x8xf32>
    %73 = tpu.concatenate %71, %72 in 0 : vector<1x8xf32>, vector<63x8xf32> -> vector<64x8xf32>
    %74 = vector.extract_strided_slice %70 {offsets = [1, 0], sizes = [63, 8], strides = [1, 1]} : vector<64x8xf32> to vector<63x8xf32>
    %75 = tpu.concatenate %74, %71 in 0 : vector<63x8xf32>, vector<1x8xf32> -> vector<64x8xf32>
    %76 = tpu.iota {dimensions = array<i32: 0>} : vector<64x8xi32>
    %c31_i32_36 = arith.constant 31 : i32
    %77 = vector.broadcast %c31_i32_36 : i32 to vector<64x8xi32>
    %78 = arith.andi %76, %77 : vector<64x8xi32>
    %c0_i32_37 = arith.constant 0 : i32
    %79 = vector.broadcast %c0_i32_37 : i32 to vector<64x8xi32>
    %80 = arith.cmpi eq, %78, %79 : vector<64x8xi32>
    %cst_38 = arith.constant 0.000000e+00 : f32
    %81 = vector.broadcast %cst_38 : f32 to vector<64x8xf32>
    %82 = arith.select %80, %81, %73 : vector<64x8xi1>, vector<64x8xf32>
    %c31_i32_39 = arith.constant 31 : i32
    %83 = vector.broadcast %c31_i32_39 : i32 to vector<64x8xi32>
    %84 = arith.cmpi eq, %78, %83 : vector<64x8xi32>
    %cst_40 = arith.constant 0.000000e+00 : f32
    %85 = vector.broadcast %cst_40 : f32 to vector<64x8xf32>
    %86 = arith.select %84, %85, %75 : vector<64x8xi1>, vector<64x8xf32>
    %87 = tpu.concatenate %82, %70, %86, %48, %49 in 1 : vector<64x8xf32>, vector<64x8xf32>, vector<64x8xf32>, vector<64x4xf32>, vector<64x1xf32> -> vector<64x29xf32>
    %c0_41 = arith.constant 0 : index
    %c0_42 = arith.constant 0 : index
    %88 = vector.load %arg5[%c0_41, %c0_42] : memref<29x8xf32, #tpu.memory_space<vmem>>, vector<29x8xf32>
    %cst_43 = arith.constant dense<0.000000e+00> : vector<64x8xf32>
    %89 = tpu.matmul %87, %88, %cst_43 {dimension_numbers = #tpu.dot_dimension_numbers<[1], [0], [0], [1], [0, 0, 1, 1], [], []>} : vector<64x29xf32>, vector<29x8xf32>, vector<64x8xf32> -> vector<64x8xf32>
    %c0_44 = arith.constant 0 : index
    %c0_45 = arith.constant 0 : index
    %90 = vector.load %arg13[%c0_44, %c0_45] : memref<64x8xf32, #tpu.memory_space<vmem>>, vector<64x8xf32>
    tpu.vector_store %arg13[%c0_44, %c0_45], %89 {strides = array<i32>} : memref<64x8xf32, #tpu.memory_space<vmem>>, vector<64x8xf32>,
    %c0_46 = arith.constant 0 : index
    %c0_47 = arith.constant 0 : index
    %91 = tpu.strided_load %arg13[%c0_46, %c0_47] {strides = array<i32: 2, 1>} : memref<64x8xf32, #tpu.memory_space<vmem>>, vector<32x8xf32>
    %c1_48 = arith.constant 1 : index
    %c0_49 = arith.constant 0 : index
    %92 = tpu.strided_load %arg13[%c1_48, %c0_49] {strides = array<i32: 2, 1>} : memref<64x8xf32, #tpu.memory_space<vmem>>, vector<32x8xf32>
    %93 = arith.addf %91, %92 : vector<32x8xf32>
    %cst_50 = arith.constant 5.000000e-01 : f32
    %94 = vector.broadcast %cst_50 : f32 to vector<32x8xf32>
    %95 = arith.mulf %94, %93 : vector<32x8xf32>
    %cst_51 = arith.constant 1.000000e+00 : f32
    %96 = vector.broadcast %cst_51 : f32 to vector<32x1xf32>
    %cst_52 = arith.constant 0.000000e+00 : f32
    %97 = vector.broadcast %cst_52 : f32 to vector<1x8xf32>
    %98 = vector.extract_strided_slice %95 {offsets = [0, 0], sizes = [31, 8], strides = [1, 1]} : vector<32x8xf32> to vector<31x8xf32>
    %99 = tpu.concatenate %97, %98 in 0 : vector<1x8xf32>, vector<31x8xf32> -> vector<32x8xf32>
    %100 = vector.extract_strided_slice %95 {offsets = [1, 0], sizes = [31, 8], strides = [1, 1]} : vector<32x8xf32> to vector<31x8xf32>
    %101 = tpu.concatenate %100, %97 in 0 : vector<31x8xf32>, vector<1x8xf32> -> vector<32x8xf32>
    %102 = tpu.iota {dimensions = array<i32: 0>} : vector<32x8xi32>
    %c15_i32 = arith.constant 15 : i32
    %103 = vector.broadcast %c15_i32 : i32 to vector<32x8xi32>
    %104 = arith.andi %102, %103 : vector<32x8xi32>
    %c0_i32_53 = arith.constant 0 : i32
    %105 = vector.broadcast %c0_i32_53 : i32 to vector<32x8xi32>
    %106 = arith.cmpi eq, %104, %105 : vector<32x8xi32>
    %cst_54 = arith.constant 0.000000e+00 : f32
    %107 = vector.broadcast %cst_54 : f32 to vector<32x8xf32>
    %108 = arith.select %106, %107, %99 : vector<32x8xi1>, vector<32x8xf32>
    %c15_i32_55 = arith.constant 15 : i32
    %109 = vector.broadcast %c15_i32_55 : i32 to vector<32x8xi32>
    %110 = arith.cmpi eq, %104, %109 : vector<32x8xi32>
    %cst_56 = arith.constant 0.000000e+00 : f32
    %111 = vector.broadcast %cst_56 : f32 to vector<32x8xf32>
    %112 = arith.select %110, %111, %101 : vector<32x8xi1>, vector<32x8xf32>
    %113 = tpu.concatenate %108, %95, %112, %96 in 1 : vector<32x8xf32>, vector<32x8xf32>, vector<32x8xf32>, vector<32x1xf32> -> vector<32x25xf32>
    %c0_57 = arith.constant 0 : index
    %c0_58 = arith.constant 0 : index
    %114 = vector.load %arg6[%c0_57, %c0_58] : memref<25x16xf32, #tpu.memory_space<vmem>>, vector<25x16xf32>
    %cst_59 = arith.constant dense<0.000000e+00> : vector<32x16xf32>
    %115 = tpu.matmul %113, %114, %cst_59 {dimension_numbers = #tpu.dot_dimension_numbers<[1], [0], [0], [1], [0, 0, 1, 1], [], []>} : vector<32x25xf32>, vector<25x16xf32>, vector<32x16xf32> -> vector<32x16xf32>
    %cst_60 = arith.constant 0.000000e+00 : f32
    %116 = vector.broadcast %cst_60 : f32 to vector<32x16xf32>
    %117 = arith.maximumf %115, %116 : vector<32x16xf32>
    %cst_61 = arith.constant 0.000000e+00 : f32
    %118 = vector.broadcast %cst_61 : f32 to vector<1x16xf32>
    %119 = vector.extract_strided_slice %117 {offsets = [0, 0], sizes = [31, 16], strides = [1, 1]} : vector<32x16xf32> to vector<31x16xf32>
    %120 = tpu.concatenate %118, %119 in 0 : vector<1x16xf32>, vector<31x16xf32> -> vector<32x16xf32>
    %121 = vector.extract_strided_slice %117 {offsets = [1, 0], sizes = [31, 16], strides = [1, 1]} : vector<32x16xf32> to vector<31x16xf32>
    %122 = tpu.concatenate %121, %118 in 0 : vector<31x16xf32>, vector<1x16xf32> -> vector<32x16xf32>
    %123 = tpu.iota {dimensions = array<i32: 0>} : vector<32x16xi32>
    %c15_i32_62 = arith.constant 15 : i32
    %124 = vector.broadcast %c15_i32_62 : i32 to vector<32x16xi32>
    %125 = arith.andi %123, %124 : vector<32x16xi32>
    %c0_i32_63 = arith.constant 0 : i32
    %126 = vector.broadcast %c0_i32_63 : i32 to vector<32x16xi32>
    %127 = arith.cmpi eq, %125, %126 : vector<32x16xi32>
    %cst_64 = arith.constant 0.000000e+00 : f32
    %128 = vector.broadcast %cst_64 : f32 to vector<32x16xf32>
    %129 = arith.select %127, %128, %120 : vector<32x16xi1>, vector<32x16xf32>
    %c15_i32_65 = arith.constant 15 : i32
    %130 = vector.broadcast %c15_i32_65 : i32 to vector<32x16xi32>
    %131 = arith.cmpi eq, %125, %130 : vector<32x16xi32>
    %cst_66 = arith.constant 0.000000e+00 : f32
    %132 = vector.broadcast %cst_66 : f32 to vector<32x16xf32>
    %133 = arith.select %131, %132, %122 : vector<32x16xi1>, vector<32x16xf32>
    %134 = tpu.concatenate %129, %117, %133, %95, %96 in 1 : vector<32x16xf32>, vector<32x16xf32>, vector<32x16xf32>, vector<32x8xf32>, vector<32x1xf32> -> vector<32x57xf32>
    %c0_67 = arith.constant 0 : index
    %c0_68 = arith.constant 0 : index
    %135 = vector.load %arg7[%c0_67, %c0_68] : memref<57x16xf32, #tpu.memory_space<vmem>>, vector<57x16xf32>
    %cst_69 = arith.constant dense<0.000000e+00> : vector<32x16xf32>
    %136 = tpu.matmul %134, %135, %cst_69 {dimension_numbers = #tpu.dot_dimension_numbers<[1], [0], [0], [1], [0, 0, 1, 1], [], []>} : vector<32x57xf32>, vector<57x16xf32>, vector<32x16xf32> -> vector<32x16xf32>
    %c0_70 = arith.constant 0 : index
    %c0_71 = arith.constant 0 : index
    %137 = vector.load %arg14[%c0_70, %c0_71] : memref<32x16xf32, #tpu.memory_space<vmem>>, vector<32x16xf32>
    tpu.vector_store %arg14[%c0_70, %c0_71], %136 {strides = array<i32>} : memref<32x16xf32, #tpu.memory_space<vmem>>, vector<32x16xf32>,
    %c0_72 = arith.constant 0 : index
    %c0_73 = arith.constant 0 : index
    %138 = tpu.strided_load %arg14[%c0_72, %c0_73] {strides = array<i32: 16, 1>} : memref<32x16xf32, #tpu.memory_space<vmem>>, vector<2x16xf32>
    %c1_74 = arith.constant 1 : index
    %c0_75 = arith.constant 0 : index
    %139 = tpu.strided_load %arg14[%c1_74, %c0_75] {strides = array<i32: 16, 1>} : memref<32x16xf32, #tpu.memory_space<vmem>>, vector<2x16xf32>
    %140 = arith.addf %138, %139 : vector<2x16xf32>
    %cst_76 = arith.constant 5.000000e-01 : f32
    %141 = vector.broadcast %cst_76 : f32 to vector<2x16xf32>
    %142 = arith.mulf %141, %140 : vector<2x16xf32>
    %cst_77 = arith.constant 0.000000e+00 : f32
    %143 = vector.broadcast %cst_77 : f32 to vector<2x16xf32>
    %144 = arith.maximumf %142, %143 : vector<2x16xf32>
    %c2 = arith.constant 2 : index
    %c0_78 = arith.constant 0 : index
    %145 = tpu.strided_load %arg14[%c2, %c0_78] {strides = array<i32: 16, 1>} : memref<32x16xf32, #tpu.memory_space<vmem>>, vector<2x16xf32>
    %c3 = arith.constant 3 : index
    %c0_79 = arith.constant 0 : index
    %146 = tpu.strided_load %arg14[%c3, %c0_79] {strides = array<i32: 16, 1>} : memref<32x16xf32, #tpu.memory_space<vmem>>, vector<2x16xf32>
    %147 = arith.addf %145, %146 : vector<2x16xf32>
    %cst_80 = arith.constant 5.000000e-01 : f32
    %148 = vector.broadcast %cst_80 : f32 to vector<2x16xf32>
    %149 = arith.mulf %148, %147 : vector<2x16xf32>
    %cst_81 = arith.constant 0.000000e+00 : f32
    %150 = vector.broadcast %cst_81 : f32 to vector<2x16xf32>
    %151 = arith.maximumf %149, %150 : vector<2x16xf32>
    %c4 = arith.constant 4 : index
    %c0_82 = arith.constant 0 : index
    %152 = tpu.strided_load %arg14[%c4, %c0_82] {strides = array<i32: 16, 1>} : memref<32x16xf32, #tpu.memory_space<vmem>>, vector<2x16xf32>
    %c5 = arith.constant 5 : index
    %c0_83 = arith.constant 0 : index
    %153 = tpu.strided_load %arg14[%c5, %c0_83] {strides = array<i32: 16, 1>} : memref<32x16xf32, #tpu.memory_space<vmem>>, vector<2x16xf32>
    %154 = arith.addf %152, %153 : vector<2x16xf32>
    %cst_84 = arith.constant 5.000000e-01 : f32
    %155 = vector.broadcast %cst_84 : f32 to vector<2x16xf32>
    %156 = arith.mulf %155, %154 : vector<2x16xf32>
    %cst_85 = arith.constant 0.000000e+00 : f32
    %157 = vector.broadcast %cst_85 : f32 to vector<2x16xf32>
    %158 = arith.maximumf %156, %157 : vector<2x16xf32>
    %c6 = arith.constant 6 : index
    %c0_86 = arith.constant 0 : index
    %159 = tpu.strided_load %arg14[%c6, %c0_86] {strides = array<i32: 16, 1>} : memref<32x16xf32, #tpu.memory_space<vmem>>, vector<2x16xf32>
    %c7 = arith.constant 7 : index
    %c0_87 = arith.constant 0 : index
    %160 = tpu.strided_load %arg14[%c7, %c0_87] {strides = array<i32: 16, 1>} : memref<32x16xf32, #tpu.memory_space<vmem>>, vector<2x16xf32>
    %161 = arith.addf %159, %160 : vector<2x16xf32>
    %cst_88 = arith.constant 5.000000e-01 : f32
    %162 = vector.broadcast %cst_88 : f32 to vector<2x16xf32>
    %163 = arith.mulf %162, %161 : vector<2x16xf32>
    %cst_89 = arith.constant 0.000000e+00 : f32
    %164 = vector.broadcast %cst_89 : f32 to vector<2x16xf32>
    %165 = arith.maximumf %163, %164 : vector<2x16xf32>
    %c8 = arith.constant 8 : index
    %c0_90 = arith.constant 0 : index
    %166 = tpu.strided_load %arg14[%c8, %c0_90] {strides = array<i32: 16, 1>} : memref<32x16xf32, #tpu.memory_space<vmem>>, vector<2x16xf32>
    %c9 = arith.constant 9 : index
    %c0_91 = arith.constant 0 : index
    %167 = tpu.strided_load %arg14[%c9, %c0_91] {strides = array<i32: 16, 1>} : memref<32x16xf32, #tpu.memory_space<vmem>>, vector<2x16xf32>
    %168 = arith.addf %166, %167 : vector<2x16xf32>
    %cst_92 = arith.constant 5.000000e-01 : f32
    %169 = vector.broadcast %cst_92 : f32 to vector<2x16xf32>
    %170 = arith.mulf %169, %168 : vector<2x16xf32>
    %cst_93 = arith.constant 0.000000e+00 : f32
    %171 = vector.broadcast %cst_93 : f32 to vector<2x16xf32>
    %172 = arith.maximumf %170, %171 : vector<2x16xf32>
    %c10 = arith.constant 10 : index
    %c0_94 = arith.constant 0 : index
    %173 = tpu.strided_load %arg14[%c10, %c0_94] {strides = array<i32: 16, 1>} : memref<32x16xf32, #tpu.memory_space<vmem>>, vector<2x16xf32>
    %c11 = arith.constant 11 : index
    %c0_95 = arith.constant 0 : index
    %174 = tpu.strided_load %arg14[%c11, %c0_95] {strides = array<i32: 16, 1>} : memref<32x16xf32, #tpu.memory_space<vmem>>, vector<2x16xf32>
    %175 = arith.addf %173, %174 : vector<2x16xf32>
    %cst_96 = arith.constant 5.000000e-01 : f32
    %176 = vector.broadcast %cst_96 : f32 to vector<2x16xf32>
    %177 = arith.mulf %176, %175 : vector<2x16xf32>
    %cst_97 = arith.constant 0.000000e+00 : f32
    %178 = vector.broadcast %cst_97 : f32 to vector<2x16xf32>
    %179 = arith.maximumf %177, %178 : vector<2x16xf32>
    %c12 = arith.constant 12 : index
    %c0_98 = arith.constant 0 : index
    %180 = tpu.strided_load %arg14[%c12, %c0_98] {strides = array<i32: 16, 1>} : memref<32x16xf32, #tpu.memory_space<vmem>>, vector<2x16xf32>
    %c13 = arith.constant 13 : index
    %c0_99 = arith.constant 0 : index
    %181 = tpu.strided_load %arg14[%c13, %c0_99] {strides = array<i32: 16, 1>} : memref<32x16xf32, #tpu.memory_space<vmem>>, vector<2x16xf32>
    %182 = arith.addf %180, %181 : vector<2x16xf32>
    %cst_100 = arith.constant 5.000000e-01 : f32
    %183 = vector.broadcast %cst_100 : f32 to vector<2x16xf32>
    %184 = arith.mulf %183, %182 : vector<2x16xf32>
    %cst_101 = arith.constant 0.000000e+00 : f32
    %185 = vector.broadcast %cst_101 : f32 to vector<2x16xf32>
    %186 = arith.maximumf %184, %185 : vector<2x16xf32>
    %c14 = arith.constant 14 : index
    %c0_102 = arith.constant 0 : index
    %187 = tpu.strided_load %arg14[%c14, %c0_102] {strides = array<i32: 16, 1>} : memref<32x16xf32, #tpu.memory_space<vmem>>, vector<2x16xf32>
    %c15 = arith.constant 15 : index
    %c0_103 = arith.constant 0 : index
    %188 = tpu.strided_load %arg14[%c15, %c0_103] {strides = array<i32: 16, 1>} : memref<32x16xf32, #tpu.memory_space<vmem>>, vector<2x16xf32>
    %189 = arith.addf %187, %188 : vector<2x16xf32>
    %cst_104 = arith.constant 5.000000e-01 : f32
    %190 = vector.broadcast %cst_104 : f32 to vector<2x16xf32>
    %191 = arith.mulf %190, %189 : vector<2x16xf32>
    %cst_105 = arith.constant 0.000000e+00 : f32
    %192 = vector.broadcast %cst_105 : f32 to vector<2x16xf32>
    %193 = arith.maximumf %191, %192 : vector<2x16xf32>
    %cst_106 = arith.constant 1.000000e+00 : f32
    %194 = vector.broadcast %cst_106 : f32 to vector<2x1xf32>
    %195 = tpu.concatenate %144, %151, %158, %165, %172, %179, %186, %193, %194 in 1 : vector<2x16xf32>, vector<2x16xf32>, vector<2x16xf32>, vector<2x16xf32>, vector<2x16xf32>, vector<2x16xf32>, vector<2x16xf32>, vector<2x16xf32>, vector<2x1xf32> -> vector<2x129xf32>
    %c0_107 = arith.constant 0 : index
    %c0_108 = arith.constant 0 : index
    %196 = vector.load %arg8[%c0_107, %c0_108] : memref<129x256xf32, #tpu.memory_space<vmem>>, vector<129x256xf32>
    %cst_109 = arith.constant dense<0.000000e+00> : vector<2x256xf32>
    %197 = tpu.matmul %195, %196, %cst_109 {dimension_numbers = #tpu.dot_dimension_numbers<[1], [0], [0], [1], [0, 0, 1, 1], [], []>} : vector<2x129xf32>, vector<129x256xf32>, vector<2x256xf32> -> vector<2x256xf32>
    %cst_110 = arith.constant 0.000000e+00 : f32
    %198 = vector.broadcast %cst_110 : f32 to vector<2x256xf32>
    %199 = arith.maximumf %197, %198 : vector<2x256xf32>
    %200 = tpu.concatenate %199, %194 in 1 : vector<2x256xf32>, vector<2x1xf32> -> vector<2x257xf32>
    %c0_111 = arith.constant 0 : index
    %c0_112 = arith.constant 0 : index
    %201 = vector.load %arg9[%c0_111, %c0_112] : memref<257x128xf32, #tpu.memory_space<vmem>>, vector<257x128xf32>
    %cst_113 = arith.constant dense<0.000000e+00> : vector<2x128xf32>
    %202 = tpu.matmul %200, %201, %cst_113 {dimension_numbers = #tpu.dot_dimension_numbers<[1], [0], [0], [1], [0, 0, 1, 1], [], []>} : vector<2x257xf32>, vector<257x128xf32>, vector<2x128xf32> -> vector<2x128xf32>
    %cst_114 = arith.constant 0.000000e+00 : f32
    %203 = vector.broadcast %cst_114 : f32 to vector<2x128xf32>
    %204 = arith.maximumf %202, %203 : vector<2x128xf32>
    %205 = tpu.concatenate %204, %194 in 1 : vector<2x128xf32>, vector<2x1xf32> -> vector<2x129xf32>
    %c0_115 = arith.constant 0 : index
    %c0_116 = arith.constant 0 : index
    %206 = vector.load %arg10[%c0_115, %c0_116] : memref<129x6xf32, #tpu.memory_space<vmem>>, vector<129x6xf32>
    %cst_117 = arith.constant dense<0.000000e+00> : vector<2x6xf32>
    %207 = tpu.matmul %205, %206, %cst_117 {dimension_numbers = #tpu.dot_dimension_numbers<[1], [0], [0], [1], [0, 0, 1, 1], [], []>} : vector<2x129xf32>, vector<129x6xf32>, vector<2x6xf32> -> vector<2x6xf32>
    %cst_118 = arith.constant 2.000000e+01 : f32
    %208 = vector.broadcast %cst_118 : f32 to vector<2x6xf32>
    %209 = arith.cmpf ogt, %207, %208 : vector<2x6xf32>
    %cst_119 = arith.constant 2.000000e+01 : f32
    %210 = vector.broadcast %cst_119 : f32 to vector<2x6xf32>
    %211 = arith.minimumf %207, %210 : vector<2x6xf32>
    %212 = math.exp %211 : vector<2x6xf32>
    %213 = math.log1p %212 : vector<2x6xf32>
    %214 = arith.select %209, %207, %213 : vector<2x6xi1>, vector<2x6xf32>
    %215 = tpu.iota {dimensions = array<i32: 1>} : vector<2x6xi32>
    %c3_i32 = arith.constant 3 : i32
    %216 = vector.broadcast %c3_i32 : i32 to vector<2x6xi32>
    %217 = arith.cmpi slt, %215, %216 : vector<2x6xi32>
    %218 = arith.select %217, %207, %214 : vector<2x6xi1>, vector<2x6xf32>
    %c0_120 = arith.constant 0 : index
    %c0_121 = arith.constant 0 : index
    %c0_122 = arith.constant 0 : index
    %219 = vector.load %arg11[%c0_120, %c0_121, %c0_122] : memref<1x2x6xf32, #tpu.memory_space<vmem>>, vector<1x2x6xf32>
    %220 = vector.shape_cast %219 : vector<1x2x6xf32> to vector<2x6xf32>
    %221 = vector.shape_cast %218 : vector<2x6xf32> to vector<1x2x6xf32>
    tpu.vector_store %arg11[%c0_120, %c0_121, %c0_122], %221 {strides = array<i32>} : memref<1x2x6xf32, #tpu.memory_space<vmem>>, vector<1x2x6xf32>,
    return
  }
  func.func @transform_0(%arg0: i32) -> (i32, i32, i32) {
    %c0_i32 = arith.constant 0 : i32
    %c0_i32_0 = arith.constant 0 : i32
    %c0_i32_1 = arith.constant 0 : i32
    return %arg0, %c0_i32, %c0_i32_0 : i32, i32, i32
  }
  func.func @transform_1(%arg0: i32) -> (i32, i32) {
    %c0_i32 = arith.constant 0 : i32
    %c0_i32_0 = arith.constant 0 : i32
    %c0_i32_1 = arith.constant 0 : i32
    return %c0_i32, %c0_i32_0 : i32, i32
  }
  func.func @transform_2(%arg0: i32) -> (i32, i32) {
    %c0_i32 = arith.constant 0 : i32
    %c0_i32_0 = arith.constant 0 : i32
    %c0_i32_1 = arith.constant 0 : i32
    return %c0_i32, %c0_i32_0 : i32, i32
  }
  func.func @transform_3(%arg0: i32) -> (i32, i32) {
    %c0_i32 = arith.constant 0 : i32
    %c0_i32_0 = arith.constant 0 : i32
    %c0_i32_1 = arith.constant 0 : i32
    return %c0_i32, %c0_i32_0 : i32, i32
  }
  func.func @transform_4(%arg0: i32) -> (i32, i32) {
    %c0_i32 = arith.constant 0 : i32
    %c0_i32_0 = arith.constant 0 : i32
    %c0_i32_1 = arith.constant 0 : i32
    return %c0_i32, %c0_i32_0 : i32, i32
  }
  func.func @transform_5(%arg0: i32) -> (i32, i32) {
    %c0_i32 = arith.constant 0 : i32
    %c0_i32_0 = arith.constant 0 : i32
    %c0_i32_1 = arith.constant 0 : i32
    return %c0_i32, %c0_i32_0 : i32, i32
  }
  func.func @transform_6(%arg0: i32) -> (i32, i32) {
    %c0_i32 = arith.constant 0 : i32
    %c0_i32_0 = arith.constant 0 : i32
    %c0_i32_1 = arith.constant 0 : i32
    return %c0_i32, %c0_i32_0 : i32, i32
  }
  func.func @transform_7(%arg0: i32) -> (i32, i32) {
    %c0_i32 = arith.constant 0 : i32
    %c0_i32_0 = arith.constant 0 : i32
    %c0_i32_1 = arith.constant 0 : i32
    return %c0_i32, %c0_i32_0 : i32, i32
  }
  func.func @transform_8(%arg0: i32) -> (i32, i32) {
    %c0_i32 = arith.constant 0 : i32
    %c0_i32_0 = arith.constant 0 : i32
    %c0_i32_1 = arith.constant 0 : i32
    return %c0_i32, %c0_i32_0 : i32, i32
  }
  func.func @transform_9(%arg0: i32) -> (i32, i32) {
    %c0_i32 = arith.constant 0 : i32
    %c0_i32_0 = arith.constant 0 : i32
    %c0_i32_1 = arith.constant 0 : i32
    return %c0_i32, %c0_i32_0 : i32, i32
  }
  func.func @transform_10(%arg0: i32) -> (i32, i32, i32) {
    %c0_i32 = arith.constant 0 : i32
    %c0_i32_0 = arith.constant 0 : i32
    %c0_i32_1 = arith.constant 0 : i32
    return %arg0, %c0_i32, %c0_i32_0 : i32, i32, i32
  }
}

</mosaic_0001>

<bundles_post_ra>
// kernel: rrnet_pallas.1
= control target key start
LH: loop header
LB: loop body
LE: loop exit
PB: predicated region body
PF: predicated region fallthrough
CT: control target
= control target key end

     0   :  { %s3800_s13 = smov 0   ;;  %s5146_s0 = inlined_call_operand.vmem [shape: f32[2,128,1], index: 0, kind: input, shape index: {}]   ;;  %s5147_s1 = inlined_call_operand.vmem [shape: f32[4,4], index: 1, kind: input, shape index: {}]   ;;  %s5148_s2 = inlined_call_operand.vmem [shape: f32[14,4], index: 2, kind: input, shape index: {}]   ;;  %s5149_s3 = inlined_call_operand.vmem [shape: f32[13,8], index: 3, kind: input, shape index: {}]   ;;  %s5150_s4 = inlined_call_operand.vmem [shape: f32[29,8], index: 4, kind: input, shape index: {}]   ;;  %s5151_s5 = inlined_call_operand.vmem [shape: f32[25,16], index: 5, kind: input, shape index: {}]   ;;  %s5152_s6 = inlined_call_operand.vmem [shape: f32[57,16], index: 6, kind: input, shape index: {}]   ;;  %s5153_s7 = inlined_call_operand.vmem [shape: f32[129,256], index: 7, kind: input, shape index: {}]   ;;  %s5154_s8 = inlined_call_operand.vmem [shape: f32[257,128], index: 8, kind: input, shape index: {}]   ;;  %s5155_s9 = inlined_call_operand.vmem [shape: f32[129,6], index: 9, kind: input, shape index: {}]   ;;  %s5156_s10 = inlined_call_operand.vmem [shape: f32[2,2,6], index: 10, kind: output, shape index: {}]  }
   0x1 LB: > { %s3226_s14 = sadd.s32 4294967295, %s3725_s13   ;;  %p3230_p0 = scmp.ge.s32.totalorder %s3725_s13, 1  ;;  %s3725_s13 = sphi %s3800_s13, %s20_s13  }
   0x2   : > { %p312_p1 = scmp.lt.s32.totalorder %s3725_s13, 3 }
   0x4   : > { %p313_p2 = pnand %p3230_p0, %p312_p1 }
   0x5   : > { %p349_p3 = scmp.lt.s32.totalorder (!%p313_p2), %s3226_s14, 1  ;;  %v748_v0 = vld [vmem:[%s5147_s1] sm:$0xf] (!%p313_p2)  ;;  %vm798_vm0 = vcmask (!%p313_p2), 1043456   ;;  %vm439_vm1 = vcmask (!%p313_p2), 1046528   ;;  %s3727_s21 = smov (!%p313_p2), 1   ;;  %v488_v13 = vlaneseq (!%p313_p2) }
   0x6   : > { %316 = sbr.rel (%p313_p2) target bundleno = 2958 (0xb8e), region = 60  ;;  %3420 = vmatprep.subr.msk.mxu0 (!%p313_p2), %vm798_vm0, %v748_v0  ;;  %s3728_s22 = smov (!%p313_p2), 2   ;;  %vm390_vm2 = vcmask (!%p313_p2), 1040384   ;;  %vm697_vm6 = vcmask (!%p313_p2), 7168   ;;  %vm714_vm7 = vcmask (!%p313_p2), 15360   ;;  %vm731_vm8 = vcmask (!%p313_p2), 23552  }
   0x7   : > { %3421 = vmatpush3.msk.msra.mxu0 (!%p313_p2), %vm798_vm0, %v748_v0  ;;  %v3861_v19 = vshrl.u32 (!%p313_p2), %v488_v13, 7  ;;  %s3729_s23 = smov (!%p313_p2), 12   ;;  %vm749_vm9 = vcmask (!%p313_p2), 31744   ;;  %vm1385_vm11 = vcmask (!%p313_p2), 1045504   ;;  %vm3730_vm12 = vmmov (!%p313_p2), 1   ;;  %s3731_s28 = smov (!%p313_p2), 4  }
   0x8   : > { %vm3552_vm13 = vmpackc.low (!%p313_p2), %vm1385_vm11, %vm3730_vm12  ;;  %s3732_s29 = smov (!%p313_p2), 8   ;;  %vm1283_vm14 = vcmask (!%p313_p2), 64512   ;;  %vm1300_vm15 = vcmask (!%p313_p2), 97280   ;;  %vm1317_vm0 = vcmask (!%p313_p2), 105472   ;;  %s3733_s16 = smov (!%p313_p2), 24  }
   0x9   : > { %v3876_v24 = vadd.s32 (!%p313_p2), 56, %v3861_v19  ;;  %v504_v52 = vadd.s32 (!%p313_p2), 120, %v3861_v19  ;;  %v505_v62 = vand.u32 (!%p313_p2), 63, %v3861_v19  ;;  %s3737_s25 = smov (!%p313_p2), 80   ;;  %s3738_s26 = smov (!%p313_p2), 64  }
   0xa   : > { %s3740_s15 = smov (!%p313_p2), 96  }
   0xb   : > { %v512_v31 = vand.u32 (!%p313_p2), 63, %v3876_v24  ;;  %v520_v57 = vand.u32 (!%p313_p2), 63, %v504_v52  ;;  %vm4005_vm5 = vcmp.eq.s32.totalorder (!%p313_p2), %v505_v62, 0 }
   0xd   : > { %s5186_s14 = smov (!%p349_p3, %s3226_s14), 1  ;;  %vm3896_vm3 = vcmp.eq.s32.totalorder %v512_v31, 63  ;;  %vm3963_vm4 = vcmp.eq.s32.totalorder %v520_v57, 63 }
   0xe   : > { %s3305_s17 = sshll.u32 %s5186_s14, 7  ;;  %s3233_s24 = sshll.u32 %s5186_s14, 1 }
   0xf   : > { %s3817_s20 = scalar_lea.vmem %s5146_s0, %s3305_s17  ;;  %s3735_s17 = smov 48  }
  0x10   : > { %v3820_v1 = vld [vmem:[%s3817_s20 + $0x18] sm:$0xff]  ;;  %v3823_v2 = vld [vmem:[%s3817_s20] sm:$0xff]  ;;  %v3826_v3 = vld [vmem:[%s3817_s20 + $0x8] sm:$0xff]  ;;  %s357_s27 = scalar_lea.vmem %s5156_s10, %s3233_s24 }
  0x11   : > { %591 = vrot.lane.b32.xlu1 %v3820_v1, %s3727_s21  ;;  %585 = vrot.lane.b32.xlu0 %v3823_v2, %s3727_s21  ;;  %v440_v4 = vrot.slane %v3823_v2, 1  ;;  %v441_v5 = vrot.slane %v3826_v3, 1  ;;  %v3835_v6 = vld [vmem:[%s3817_s20 + $0x10] sm:$0xff]  ;;  %v3840_v9 = vld [vmem:[%s3817_s20 + $0x20] sm:$0xff]  ;;  %v445_v11 = vrot.slane %v3820_v1, 1  ;;  %v392_v14 = vrot.slane %v3826_v3, 7 }
  0x12   : > { %v443_v7 = vrot.slane %v3835_v6, 1  ;;  %v447_v12 = vrot.slane %v3840_v9, 1  ;;  %v3855_v17 = vld [vmem:[%s3817_s20 + $0x28] sm:$0xff]  ;;  %v3858_v18 = vld [vmem:[%s3817_s20 + $0x30] sm:$0xff]  ;;  %v391_v20 = vrot.slane %v3823_v2, 7  ;;  %v3879_v25 = vld [vmem:[%s3817_s20 + $0x38] sm:$0xff] }
  0x13   : > { %v442_v8 = vsel %vm439_vm1, %v440_v4, %v441_v5  ;;  %v449_v22 = vrot.slane %v3855_v17, 1  ;;  %v451_v23 = vrot.slane %v3858_v18, 1  ;;  %v3882_v26 = vld [vmem:[%s3817_s20 + $0x40] sm:$0xff]  ;;  %v453_v29 = vrot.slane %v3879_v25, 1  ;;  %v3908_v36 = vld [vmem:[%s3817_s20 + $0x48] sm:$0xff]  ;;  %v3911_v37 = vld [vmem:[%s3817_s20 + $0x50] sm:$0xff] }
  0x14   : > { %v444_v10 = vsel %vm439_vm1, %v441_v5, %v443_v7  ;;  %v446_v15 = vsel %vm439_vm1, %v443_v7, %v445_v11  ;;  %v448_v16 = vsel %vm439_vm1, %v445_v11, %v447_v12  ;;  %v3871_v21 = vsel %vm390_vm2, %v391_v20, %v392_v14  ;;  %v3924_v42 = vld [vmem:[%s3817_s20 + $0x58] sm:$0xff]  ;;  %v3927_v43 = vld [vmem:[%s3817_s20 + $0x60] sm:$0xff]  ;;  %v3940_v48 = vld [vmem:[%s3817_s20 + $0x68] sm:$0xff] }
  0x15   : > { %587 = vrot.lane.b32.xlu0 %v3826_v3, %s3727_s21  ;;  %649 = vrot.lane.b32.xlu1 %v442_v8, %s3728_s22  ;;  %v450_v27 = vsel %vm439_vm1, %v447_v12, %v449_v22  ;;  %v452_v28 = vsel %vm439_vm1, %v449_v22, %v451_v23  ;;  %v455_v30 = vrot.slane %v3882_v26, 1  ;;  %v454_v34 = vsel %vm439_vm1, %v451_v23, %v453_v29  ;;  %v3943_v49 = vld [vmem:[%s3817_s20 + $0x70] sm:$0xff]  ;;  %v3951_v53 = vld [vmem:[%s3817_s20 + $0x78] sm:$0xff] }
  0x16   : > { %v457_v38 = vrot.slane %v3908_v36, 1  ;;  %v459_v39 = vrot.slane %v3911_v37, 1  ;;  %v461_v44 = vrot.slane %v3924_v42, 1  ;;  %v463_v45 = vrot.slane %v3927_v43, 1 }
  0x17   : > { %v456_v32 = vsel %vm439_vm1, %v453_v29, %v455_v30  ;;  %v465_v50 = vrot.slane %v3940_v48, 1  ;;  %v467_v51 = vrot.slane %v3943_v49, 1  ;;  %v469_v56 = vrot.slane %v3951_v53, 1 }
  0x18   : > { %v576_v35 = vsel %vm3896_vm3, 0.0, %v456_v32  ;;  %v458_v40 = vsel %vm439_vm1, %v455_v30, %v457_v38  ;;  %v460_v41 = vsel %vm439_vm1, %v457_v38, %v459_v39  ;;  %v462_v46 = vsel %vm439_vm1, %v459_v39, %v461_v44 }
  0x19   : > { %589 = vrot.lane.b32.xlu0 %v3835_v6, %s3727_s21  ;;  %651 = vrot.lane.b32.xlu1 %v444_v10, %s3728_s22  ;;  %v464_v47 = vsel %vm439_vm1, %v461_v44, %v463_v45  ;;  %v466_v54 = vsel %vm439_vm1, %v463_v45, %v465_v50  ;;  %v468_v55 = vsel %vm439_vm1, %v465_v50, %v467_v51  ;;  %v487_v58 = vsel %vm439_vm1, %v469_v56, 0.0 }
  0x1a   : > { %v470_v60 = vsel %vm439_vm1, %v467_v51, %v469_v56  ;;  %v584_v61 = vsel %vm3963_vm4, 0.0, %v487_v58  ;;  %v438_v0 = vsel %vm390_vm2, 0.0, %v391_v20  ;;  %v396_v12 = vrot.slane %v3820_v1, 7 }
  0x1b   : > { %v537_v7 = vsel %vm4005_vm5, 0.0, %v438_v0  ;;  %v400_v32 = vrot.slane %v3855_v17, 7  ;;  %v402_v52 = vrot.slane %v3858_v18, 7  ;;  %v497_v56 = vadd.s32 64, %v3861_v19 }
  0x1d   : > { %653 = vrot.lane.b32.xlu0 %v446_v15, %s3728_s22  ;;  %655 = vrot.lane.b32.xlu1 %v448_v16, %s3728_s22  ;;  %v394_v15 = vrot.slane %v3835_v6, 7  ;;  %v513_v62 = vand.u32 63, %v497_v56 }
  0x1f   : > { %vm4063_vm10 = vcmp.eq.s32.totalorder %v513_v62, 0 }
  0x21   : > { %593 = vrot.lane.b32.xlu0 %v3840_v9, %s3727_s21  ;;  %595 = vrot.lane.b32.xlu1 %v3855_v17, %s3727_s21 }
  0x25   : > { %657 = vrot.lane.b32.xlu0 %v450_v27, %s3728_s22  ;;  %659 = vrot.lane.b32.xlu1 %v452_v28, %s3728_s22  ;;  %v397_v27 = vsel %vm390_vm2, %v394_v15, %v396_v12  ;;  %v395_v28 = vsel %vm390_vm2, %v392_v14, %v394_v15  ;;  %v398_v14 = vrot.slane %v3840_v9, 7 }
  0x29   : > { %597 = vrot.lane.b32.xlu0 %v3858_v18, %s3727_s21  ;;  %599 = vrot.lane.b32.xlu1 %v3879_v25, %s3727_s21 }
  0x2d   : > { %661 = vrot.lane.b32.xlu0 %v454_v34, %s3728_s22  ;;  %663 = vrot.lane.b32.xlu1 %v576_v35, %s3728_s22 }
  0x31   : > { %601 = vrot.lane.b32.xlu0 %v3882_v26, %s3727_s21  ;;  %603 = vrot.lane.b32.xlu1 %v3908_v36, %s3727_s21 }
  0x35   : > { %665 = vrot.lane.b32.xlu0 %v458_v40, %s3728_s22  ;;  %667 = vrot.lane.b32.xlu1 %v460_v41, %s3728_s22  ;;  %v399_v41 = vsel %vm390_vm2, %v396_v12, %v398_v14 }
  0x39   : > { %605 = vrot.lane.b32.xlu0 %v3911_v37, %s3727_s21  ;;  %607 = vrot.lane.b32.xlu1 %v3924_v42, %s3727_s21 }
  0x3d   : > { %669 = vrot.lane.b32.xlu0 %v462_v46, %s3728_s22  ;;  %671 = vrot.lane.b32.xlu1 %v464_v47, %s3728_s22  ;;  %v404_v47 = vrot.slane %v3879_v25, 7 }
  0x41   : > { %609 = vrot.lane.b32.xlu0 %v3927_v43, %s3727_s21  ;;  %611 = vrot.lane.b32.xlu1 %v3940_v48, %s3727_s21 }
  0x45   : > { %673 = vrot.lane.b32.xlu0 %v466_v54, %s3728_s22  ;;  %675 = vrot.lane.b32.xlu1 %v468_v55, %s3728_s22 }
  0x49   : > { %613 = vrot.lane.b32.xlu0 %v3943_v49, %s3727_s21  ;;  %615 = vrot.lane.b32.xlu1 %v3951_v53, %s3727_s21  ;;  %s3734_s21 = smov 16  }
  0x4d   : > { %677 = vrot.lane.b32.xlu0 %v470_v60, %s3728_s22  ;;  %679 = vrot.lane.b32.xlu1 %v584_v61, %s3728_s22  ;;  %v405_v60 = vsel %vm390_vm2, %v402_v52, %v404_v47  ;;  %v406_v61 = vrot.slane %v3882_v26, 7 }
  0x4f   : > { %v407_v15 = vsel %vm390_vm2, %v404_v47, %v406_v61 }
  0x51   : > { %1221 = vrot.lane.b32.xlu1 %v3826_v3, %s3729_s23  ;;  %1219 = vrot.lane.b32.xlu0 %v3823_v2, %s3729_s23 }
  0x55   : > { %1225 = vrot.lane.b32.xlu1 %v3820_v1, %s3729_s23  ;;  %1223 = vrot.lane.b32.xlu0 %v3835_v6, %s3729_s23 }
  0x59   : > { %1229 = vrot.lane.b32.xlu1 %v3855_v17, %s3729_s23  ;;  %1227 = vrot.lane.b32.xlu0 %v3840_v9, %s3729_s23  ;;  %v401_v17 = vsel %vm390_vm2, %v398_v14, %v400_v32  ;;  %v416_v14 = vrot.slane %v3940_v48, 7 }
  0x5d   : > { %1233 = vrot.lane.b32.xlu1 %v3879_v25, %s3729_s23  ;;  %1231 = vrot.lane.b32.xlu0 %v3858_v18, %s3729_s23  ;;  %v403_v25 = vsel %vm390_vm2, %v400_v32, %v402_v52  ;;  %v418_v52 = vrot.slane %v3943_v49, 7 }
  0x61   : > { %1237 = vrot.lane.b32.xlu1 %v3908_v36, %s3729_s23  ;;  %1235 = vrot.lane.b32.xlu0 %v3882_v26, %s3729_s23 }
  0x65   : > { %1241 = vrot.lane.b32.xlu1 %v3924_v42, %s3729_s23  ;;  %1239 = vrot.lane.b32.xlu0 %v3911_v37, %s3729_s23 }
  0x69   : > { %1245 = vrot.lane.b32.xlu1 %v3940_v48, %s3729_s23  ;;  %1243 = vrot.lane.b32.xlu0 %v3927_v43, %s3729_s23 }
  0x83   : > { %v592_v4 = vpop.permute.xlu1 %591  ;;  %v586_v5 = vpop.permute.xlu0 %585 }
  0x84   : > { %v698_v8 = vsel %vm697_vm6, %v537_v7, %v586_v5  ;;  %v701_v29 = vsel %vm697_vm6, %v397_v27, %v592_v4  ;;  %v408_v7 = vrot.slane %v3908_v36, 7  ;;  %v545_v36 = vsel %vm4063_vm10, 0.0, %v407_v15  ;;  %v1334_v15 = vld [vmem:[%s5148_s2] sm:$0xff] }
  0x87   : > { %v588_v10 = vpop.permute.xlu0 %587  ;;  %v650_v11 = vpop.permute.xlu1 %649 }
  0x88   : > { %v715_v2 = vsel %vm714_vm7, %v698_v8, %v650_v11  ;;  %v699_v20 = vsel %vm697_vm6, %v3871_v21, %v588_v10 }
  0x89   : > { %v732_v16 = vsel %vm731_vm8, %v715_v2, 1.0 }
  0x8a   : > { %3422 = vmatprep.mubr.msk.f32.mxu0 %vm749_vm9, %v732_v16 }
  0x8b   : > { %v590_v22 = vpop.permute.xlu0 %589  ;;  %v652_v23 = vpop.permute.xlu1 %651 }
  0x8c   : > { %v716_v1 = vsel %vm714_vm7, %v699_v20, %v652_v23  ;;  %v700_v30 = vsel %vm697_vm6, %v395_v28, %v590_v22  ;;  %v409_v20 = vsel %vm390_vm2, %v406_v61, %v408_v7 }
  0x8d   : > { %v733_v6 = vsel %vm731_vm8, %v716_v1, 1.0  ;;  %v412_v1 = vrot.slane %v3924_v42, 7 }
  0x8e   : > { %3423 = vmatmul.mubr.msk.f32.vlgmr.msra.gmra.mrb[0].mxu0 %vm749_vm9, %v733_v6 }
  0x8f   : > { %v654_v31 = vpop.permute.xlu0 %653  ;;  %v656_v21 = vpop.permute.xlu1 %655 }
  0x90   : > { %v717_v34 = vsel %vm714_vm7, %v700_v30, %v654_v31  ;;  %v718_v3 = vsel %vm714_vm7, %v701_v29, %v656_v21  ;;  %v410_v30 = vrot.slane %v3911_v37, 7 }
  0x91   : > { %v734_v35 = vsel %vm731_vm8, %v717_v34, 1.0  ;;  %v735_v38 = vsel %vm731_vm8, %v718_v3, 1.0 }
  0x92   : > { %3425 = vmatprep.mubr.msk.f32.mxu0 %vm749_vm9, %v734_v35  ;;  %v411_v3 = vsel %vm390_vm2, %v408_v7, %v410_v30  ;;  %v413_v42 = vsel %vm390_vm2, %v410_v30, %v412_v1  ;;  %v414_v35 = vrot.slane %v3927_v43, 7 }
  0x93   : > { %v594_v39 = vpop.permute.xlu0 %593  ;;  %v596_v40 = vpop.permute.xlu1 %595  ;;  %3426 = vmatmul.mubr.msk.f32.gmra.mrb[2].mxu0 %vm749_vm9, %v735_v38 }
  0x94   : > { %v702_v44 = vsel %vm697_vm6, %v399_v41, %v594_v39  ;;  %v703_v45 = vsel %vm697_vm6, %v401_v17, %v596_v40  ;;  %v415_v48 = vsel %vm390_vm2, %v412_v1, %v414_v35  ;;  %v417_v43 = vsel %vm390_vm2, %v414_v35, %v416_v14 }
  0x97   : > { %v658_v46 = vpop.permute.xlu0 %657  ;;  %v660_v9 = vpop.permute.xlu1 %659 }
  0x98   : > { %v719_v50 = vsel %vm714_vm7, %v702_v44, %v658_v46  ;;  %v720_v51 = vsel %vm714_vm7, %v703_v45, %v660_v9 }
  0x99   : > { %v736_v54 = vsel %vm731_vm8, %v719_v50, 1.0  ;;  %v737_v55 = vsel %vm731_vm8, %v720_v51, 1.0  ;;  %v420_v51 = vrot.slane %v3951_v53, 7 }
  0x9a   : > { %3428 = vmatprep.mubr.msk.f32.mxu0 %vm749_vm9, %v736_v54 }
  0x9b   : > { %v598_v57 = vpop.permute.xlu0 %597  ;;  %v600_v58 = vpop.permute.xlu1 %599  ;;  %3429 = vmatmul.mubr.msk.f32.gmra.mrb[4].mxu0 %vm749_vm9, %v737_v55  ;;  %v421_v61 = vsel %vm390_vm2, %v418_v52, %v420_v51 }
  0x9c   : > { %v704_v18 = vsel %vm697_vm6, %v403_v25, %v598_v57  ;;  %v705_v0 = vsel %vm697_vm6, %v405_v60, %v600_v58  ;;  %v419_v60 = vsel %vm390_vm2, %v416_v14, %v418_v52 }
  0x9f   : > { %v662_v4 = vpop.permute.xlu0 %661  ;;  %v664_v5 = vpop.permute.xlu1 %663 }
  0xa0   : > { %v721_v8 = vsel %vm714_vm7, %v704_v18, %v662_v4  ;;  %v722_v10 = vsel %vm714_vm7, %v705_v0, %v664_v5 }
  0xa1   : > { %v738_v11 = vsel %vm731_vm8, %v721_v8, 1.0  ;;  %v739_v12 = vsel %vm731_vm8, %v722_v10, 1.0 }
  0xa2   : > { %3431 = vmatprep.mubr.msk.f32.mxu0 %vm749_vm9, %v738_v11 }
  0xa3   : > { %v602_v2 = vpop.permute.xlu0 %601  ;;  %v604_v16 = vpop.permute.xlu1 %603  ;;  %3432 = vmatmul.mubr.msk.f32.gmra.mrb[6].mxu0 %vm749_vm9, %v739_v12 }
  0xa4   : > { %v706_v22 = vsel %vm697_vm6, %v545_v36, %v602_v2  ;;  %v707_v23 = vsel %vm697_vm6, %v409_v20, %v604_v16  ;;  %v1335_v2 = vld [vmem:[%s5148_s2 + $0x8] sm:$0x3f] }
  0xa5   : > { %v3551_v16 = vpack.c.bf16 %v1335_v2, %v1334_v15 }
  0xa7   : > { %v666_v27 = vpop.permute.xlu0 %665  ;;  %v668_v28 = vpop.permute.xlu1 %667  ;;  %3553 = vmatprep.subr.msk.bf16.mxu1 %vm3552_vm13, %v3551_v16 }
  0xa8   : > { %v723_v6 = vsel %vm714_vm7, %v706_v22, %v666_v27  ;;  %v724_v29 = vsel %vm714_vm7, %v707_v23, %v668_v28  ;;  %3556 = vmatpush3.bf16.msk.msra.mxu1 %vm3552_vm13, %v3551_v16  ;;  %vm2085_vm13 = vcmask 195584  }
  0xa9   : > { %v740_v31 = vsel %vm731_vm8, %v723_v6, 1.0  ;;  %v741_v21 = vsel %vm731_vm8, %v724_v29, 1.0 }
  0xaa   : > { %3434 = vmatprep.mubr.msk.f32.mxu0 %vm749_vm9, %v740_v31 }
  0xab   : > { %v606_v32 = vpop.permute.xlu0 %605  ;;  %v608_v34 = vpop.permute.xlu1 %607  ;;  %3435 = vmatmul.mubr.msk.f32.gmra.mrb[8].mxu0 %vm749_vm9, %v741_v21 }
  0xac   : > { %v708_v37 = vsel %vm697_vm6, %v411_v3, %v606_v32  ;;  %v709_v38 = vsel %vm697_vm6, %v413_v42, %v608_v34 }
  0xaf   : > { %v670_v39 = vpop.permute.xlu0 %669  ;;  %v672_v40 = vpop.permute.xlu1 %671 }
  0xb0   : > { %v725_v41 = vsel %vm714_vm7, %v708_v37, %v670_v39  ;;  %v726_v17 = vsel %vm714_vm7, %v709_v38, %v672_v40 }
  0xb1   : > { %v742_v44 = vsel %vm731_vm8, %v725_v41, 1.0  ;;  %v743_v45 = vsel %vm731_vm8, %v726_v17, 1.0 }
  0xb2   : > { %3437 = vmatprep.mubr.msk.f32.mxu0 %vm749_vm9, %v742_v44 }
  0xb3   : > { %v610_v46 = vpop.permute.xlu0 %609  ;;  %3438 = vmatmul.mubr.msk.f32.gmra.mrb[10].mxu0 %vm749_vm9, %v743_v45  ;;  %v612_v9 = vpop.permute.xlu1 %611 }
  0xb4   : > { %v710_v47 = vsel %vm697_vm6, %v415_v48, %v610_v46  ;;  %v711_v50 = vsel %vm697_vm6, %v417_v43, %v612_v9 }
  0xb7   : > { %v674_v54 = vpop.permute.xlu0 %673  ;;  %v676_v55 = vpop.permute.xlu1 %675 }
  0xb8   : > { %v727_v56 = vsel %vm714_vm7, %v710_v47, %v674_v54  ;;  %v728_v57 = vsel %vm714_vm7, %v711_v50, %v676_v55 }
  0xb9   : > { %v744_v58 = vsel %vm731_vm8, %v727_v56, 1.0  ;;  %v745_v25 = vsel %vm731_vm8, %v728_v57, 1.0 }
  0xba   : > { %3440 = vmatprep.mubr.msk.f32.mxu0 %vm749_vm9, %v744_v58 }
  0xbb   : > { %v614_v62 = vpop.permute.xlu0 %613  ;;  %3441 = vmatmul.mubr.msk.f32.gmra.mrb[12].mxu0 %vm749_vm9, %v745_v25  ;;  %v616_v18 = vpop.permute.xlu1 %615 }
  0xbc   : > { %v712_v0 = vsel %vm697_vm6, %v419_v60, %v614_v62  ;;  %v713_v4 = vsel %vm697_vm6, %v421_v61, %v616_v18 }
  0xbf   : > { %v678_v5 = vpop.permute.xlu0 %677  ;;  %v680_v7 = vpop.permute.xlu1 %679 }
  0xc0   : > { %v729_v8 = vsel %vm714_vm7, %v712_v0, %v678_v5  ;;  %v730_v10 = vsel %vm714_vm7, %v713_v4, %v680_v7 }
  0xc1   : > { %v746_v11 = vsel %vm731_vm8, %v729_v8, 1.0  ;;  %v747_v12 = vsel %vm731_vm8, %v730_v10, 1.0 }
  0xc2   : > { %3443 = vmatprep.mubr.msk.f32.mxu0 %vm749_vm9, %v746_v11 }
  0xc3   : > { %3444 = vmatmul.mubr.msk.f32.gmra.mrb[14].mxu0 %vm749_vm9, %v747_v12 }
 0x161   : > { %v3424_v36 = vpop.f32.mrb[0].mxu0 }
 0x162   : > { %v948_v20 = vmax.f32 %v3424_v36, 0.0  ;;  %v868_v22 = vpop.f32.mrb[1].mxu0 }
 0x163   : > { %v4123_v23 = vmax.f32 %v868_v22, 0.0 }
 0x164   : > { %v980_v27 = vrot.slane %v948_v20, 7  ;;  %v1028_v28 = vrot.slane %v948_v20, 1  ;;  %1109 = vrot.lane.b32.xlu1 %v948_v20, %s3731_s28 }
 0x165   : > { %v979_v1 = vrot.slane %v4123_v23, 7  ;;  %v1027_v6 = vrot.slane %v4123_v23, 1  ;;  %1107 = vrot.lane.b32.xlu0 %v4123_v23, %s3731_s28 }
 0x166   : > { %v3427_v29 = vpop.f32.mrb[2].mxu0 }
 0x167   : > { %v950_v30 = vmax.f32 %v3427_v29, 0.0  ;;  %v878_v31 = vpop.f32.mrb[3].mxu0  ;;  %v1029_v21 = vsel %vm439_vm1, %v1027_v6, %v1028_v28  ;;  %v4134_v32 = vsel %vm390_vm2, %v979_v1, %v980_v27 }
 0x168   : > { %v949_v34 = vmax.f32 %v878_v31, 0.0 }
 0x169   : > { %v984_v3 = vrot.slane %v950_v30, 7  ;;  %v1032_v42 = vrot.slane %v950_v30, 1  ;;  %1171 = vrot.lane.b32.xlu0 %v1029_v21, %s3732_s29  ;;  %1113 = vrot.lane.b32.xlu1 %v950_v30, %s3731_s28 }
 0x16a   : > { %v982_v14 = vrot.slane %v949_v34, 7  ;;  %v1030_v35 = vrot.slane %v949_v34, 1 }
 0x16c   : > { %v1031_v37 = vsel %vm439_vm1, %v1028_v28, %v1030_v35  ;;  %v1033_v38 = vsel %vm439_vm1, %v1030_v35, %v1032_v42  ;;  %v4141_v39 = vsel %vm390_vm2, %v982_v14, %v984_v3  ;;  %v4144_v40 = vsel %vm390_vm2, %v980_v27, %v982_v14 }
 0x16d   : > { %1111 = vrot.lane.b32.xlu0 %v949_v34, %s3731_s28  ;;  %1173 = vrot.lane.b32.xlu1 %v1031_v37, %s3732_s29 }
 0x16e   : > { %v3430_v41 = vpop.f32.mrb[4].mxu0 }
 0x16f   : > { %v952_v17 = vmax.f32 %v3430_v41, 0.0  ;;  %v888_v44 = vpop.f32.mrb[5].mxu0 }
 0x170   : > { %v951_v45 = vmax.f32 %v888_v44, 0.0 }
 0x171   : > { %v988_v48 = vrot.slane %v952_v17, 7  ;;  %v1036_v43 = vrot.slane %v952_v17, 1  ;;  %1175 = vrot.lane.b32.xlu0 %v1033_v38, %s3732_s29  ;;  %1117 = vrot.lane.b32.xlu1 %v952_v17, %s3731_s28 }
 0x172   : > { %v986_v46 = vrot.slane %v951_v45, 7  ;;  %v1034_v9 = vrot.slane %v951_v45, 1 }
 0x174   : > { %v1035_v47 = vsel %vm439_vm1, %v1032_v42, %v1034_v9  ;;  %v1037_v50 = vsel %vm439_vm1, %v1034_v9, %v1036_v43  ;;  %v4153_v51 = vsel %vm390_vm2, %v986_v46, %v988_v48  ;;  %v4156_v52 = vsel %vm390_vm2, %v984_v3, %v986_v46 }
 0x175   : > { %1115 = vrot.lane.b32.xlu0 %v951_v45, %s3731_s28  ;;  %1177 = vrot.lane.b32.xlu1 %v1035_v47, %s3732_s29 }
 0x176   : > { %v3433_v54 = vpop.f32.mrb[6].mxu0 }
 0x177   : > { %v954_v55 = vmax.f32 %v3433_v54, 0.0  ;;  %v898_v56 = vpop.f32.mrb[7].mxu0 }
 0x178   : > { %v953_v57 = vmax.f32 %v898_v56, 0.0 }
 0x179   : > { %v992_v58 = vrot.slane %v954_v55, 7  ;;  %v1040_v25 = vrot.slane %v954_v55, 1  ;;  %1179 = vrot.lane.b32.xlu0 %v1037_v50, %s3732_s29  ;;  %1121 = vrot.lane.b32.xlu1 %v954_v55, %s3731_s28 }
 0x17a   : > { %v990_v60 = vrot.slane %v953_v57, 7  ;;  %v1038_v61 = vrot.slane %v953_v57, 1 }
 0x17c   : > { %v1039_v62 = vsel %vm439_vm1, %v1036_v43, %v1038_v61  ;;  %v1041_v18 = vsel %vm439_vm1, %v1038_v61, %v1040_v25  ;;  %v4165_v0 = vsel %vm390_vm2, %v990_v60, %v992_v58  ;;  %v4168_v4 = vsel %vm390_vm2, %v988_v48, %v990_v60 }
 0x17d   : > { %1119 = vrot.lane.b32.xlu0 %v953_v57, %s3731_s28  ;;  %1181 = vrot.lane.b32.xlu1 %v1039_v62, %s3732_s29 }
 0x17e   : > { %v3436_v5 = vpop.f32.mrb[8].mxu0 }
 0x17f   : > { %v956_v7 = vmax.f32 %v3436_v5, 0.0  ;;  %v908_v8 = vpop.f32.mrb[9].mxu0 }
 0x180   : > { %v955_v10 = vmax.f32 %v908_v8, 0.0 }
 0x181   : > { %v996_v11 = vrot.slane %v956_v7, 7  ;;  %v1044_v12 = vrot.slane %v956_v7, 1  ;;  %1183 = vrot.lane.b32.xlu0 %v1041_v18, %s3732_s29  ;;  %1125 = vrot.lane.b32.xlu1 %v956_v7, %s3731_s28 }
 0x182   : > { %v994_v15 = vrot.slane %v955_v10, 7  ;;  %v1042_v2 = vrot.slane %v955_v10, 1 }
 0x184   : > { %v1045_v16 = vsel %vm439_vm1, %v1042_v2, %v1044_v12  ;;  %v1043_v36 = vsel %vm439_vm1, %v1040_v25, %v1042_v2  ;;  %v4177_v20 = vsel %vm390_vm2, %v994_v15, %v996_v11  ;;  %v4180_v22 = vsel %vm390_vm2, %v992_v58, %v994_v15 }
 0x185   : > { %1123 = vrot.lane.b32.xlu0 %v955_v10, %s3731_s28  ;;  %v1098_v3 = vsel %vm3896_vm3, 0.0, %v1043_v36  ;;  %vm1336_vm3 = vcmask 113664  }
 0x186   : > { %v3439_v27 = vpop.f32.mrb[10].mxu0 }
 0x187   : > { %v958_v28 = vmax.f32 %v3439_v27, 0.0  ;;  %v918_v6 = vpop.f32.mrb[11].mxu0 }
 0x188   : > { %v957_v29 = vmax.f32 %v918_v6, 0.0 }
 0x189   : > { %v1000_v30 = vrot.slane %v958_v28, 7  ;;  %v1048_v31 = vrot.slane %v958_v28, 1  ;;  %1187 = vrot.lane.b32.xlu0 %v1045_v16, %s3732_s29  ;;  %1129 = vrot.lane.b32.xlu1 %v958_v28, %s3731_s28 }
 0x18a   : > { %v998_v21 = vrot.slane %v957_v29, 7  ;;  %v1046_v34 = vrot.slane %v957_v29, 1 }
 0x18c   : > { %v1049_v42 = vsel %vm439_vm1, %v1046_v34, %v1048_v31  ;;  %v1047_v14 = vsel %vm439_vm1, %v1044_v12, %v1046_v34  ;;  %v4190_v35 = vsel %vm390_vm2, %v998_v21, %v1000_v30  ;;  %v4193_v37 = vsel %vm390_vm2, %v996_v11, %v998_v21  ;;  %v1222_v11 = vpop.permute.xlu1 %1221  ;;  %v1220_v12 = vpop.permute.xlu0 %1219 }
 0x18d   : > { %1185 = vrot.lane.b32.xlu1 %v1098_v3, %s3732_s29  ;;  %1127 = vrot.lane.b32.xlu0 %v957_v29, %s3731_s28  ;;  %v1026_v34 = vsel %vm390_vm2, 0.0, %v979_v1 }
 0x18e   : > { %v3442_v38 = vpop.f32.mrb[12].mxu0  ;;  %v1075_v3 = vsel %vm4005_vm5, 0.0, %v1026_v34 }
 0x18f   : > { %v960_v41 = vmax.f32 %v3442_v38, 0.0  ;;  %v928_v17 = vpop.f32.mrb[13].mxu0 }
 0x190   : > { %v959_v44 = vmax.f32 %v928_v17, 0.0  ;;  %v1226_v15 = vpop.permute.xlu1 %1225  ;;  %v1224_v2 = vpop.permute.xlu0 %1223 }
 0x191   : > { %v1004_v33 = vrot.slane %v960_v41, 7  ;;  %v1052_v45 = vrot.slane %v960_v41, 1  ;;  %1191 = vrot.lane.b32.xlu0 %v1049_v42, %s3732_s29  ;;  %1189 = vrot.lane.b32.xlu1 %v1047_v14, %s3732_s29 }
 0x192   : > { %v1002_v48 = vrot.slane %v959_v44, 7  ;;  %v1050_v43 = vrot.slane %v959_v44, 1 }
 0x194   : > { %v1053_v46 = vsel %vm439_vm1, %v1050_v43, %v1052_v45  ;;  %v1051_v9 = vsel %vm439_vm1, %v1048_v31, %v1050_v43  ;;  %v4202_v47 = vsel %vm390_vm2, %v1002_v48, %v1004_v33  ;;  %v4205_v50 = vsel %vm390_vm2, %v1000_v30, %v1002_v48  ;;  %v1230_v16 = vpop.permute.xlu1 %1229  ;;  %v1228_v36 = vpop.permute.xlu0 %1227 }
 0x195   : > { %1133 = vrot.lane.b32.xlu1 %v960_v41, %s3731_s28  ;;  %1131 = vrot.lane.b32.xlu0 %v959_v44, %s3731_s28 }
 0x196   : > { %v3445_v54 = vpop.f32.mrb[14].mxu0 }
 0x197   : > { %v962_v55 = vmax.f32 %v3445_v54, 0.0  ;;  %v938_v56 = vpop.f32.mrb[15].mxu0 }
 0x198   : > { %v961_v57 = vmax.f32 %v938_v56, 0.0  ;;  %v4231_v27 = vpop.permute.xlu1 %1233  ;;  %v1232_v28 = vpop.permute.xlu0 %1231 }
 0x199   : > { %v1008_v58 = vrot.slane %v962_v55, 7  ;;  %v1056_v25 = vrot.slane %v962_v55, 1  ;;  %1195 = vrot.lane.b32.xlu0 %v1053_v46, %s3732_s29  ;;  %1193 = vrot.lane.b32.xlu1 %v1051_v9, %s3732_s29 }
 0x19a   : > { %v1006_v60 = vrot.slane %v961_v57, 7  ;;  %v1054_v61 = vrot.slane %v961_v57, 1 }
 0x19b   : > { %v1074_v8 = vsel %vm439_vm1, %v1056_v25, 0.0 }
 0x19c   : > { %v1057_v62 = vsel %vm439_vm1, %v1054_v61, %v1056_v25  ;;  %v1055_v18 = vsel %vm439_vm1, %v1052_v45, %v1054_v61  ;;  %v4214_v5 = vsel %vm390_vm2, %v1006_v60, %v1008_v58  ;;  %v4219_v7 = vsel %vm390_vm2, %v1004_v33, %v1006_v60  ;;  %v4233_v6 = vpop.permute.xlu1 %1237  ;;  %v4235_v59 = vpop.permute.xlu0 %1235 }
 0x19d   : > { %1137 = vrot.lane.b32.xlu1 %v962_v55, %s3731_s28  ;;  %1135 = vrot.lane.b32.xlu0 %v961_v57, %s3731_s28  ;;  %v1106_v10 = vsel %vm3963_vm4, 0.0, %v1074_v8  ;;  %vm1799_vm4 = vcmask 1044480  }
 0x19e   : > { %vm4369_vm5 = vmpackc.low %vm1799_vm4, %vm3730_vm12 }
 0x1a0   : > { %v4237_v29 = vpop.permute.xlu1 %1241 }
 0x1a1   : > { %1199 = vrot.lane.b32.xlu0 %v1057_v62, %s3732_s29  ;;  %1197 = vrot.lane.b32.xlu1 %v1055_v18, %s3732_s29 }
 0x1a4   : > { %v4241_v30 = vpop.permute.xlu1 %1245 }
 0x1a5   : > { %1247 = vrot.lane.b32.xlu0 %v3943_v49, %s3729_s23  ;;  %1201 = vrot.lane.b32.xlu1 %v1106_v10, %s3732_s29  ;;  %v4239_v49 = vpop.permute.xlu0 %1239 }
 0x1a9   : > { %1249 = vrot.lane.b32.xlu1 %v3951_v53, %s3729_s23  ;;  %v4243_v53 = vpop.permute.xlu0 %1243  ;;  %s3741_s23 = smov 112  }
 0x1d6   : > { %v1110_v31 = vpop.permute.xlu1 %1109 }
 0x1d7   : > { %v1108_v21 = vpop.permute.xlu0 %1107  ;;  %v1268_v23 = vsel %vm749_vm9, %v4134_v32, %v1110_v31 }
 0x1d8   : > { %v1267_v42 = vsel %vm749_vm9, %v1075_v3, %v1108_v21 }
 0x1db   : > { %v1172_v14 = vpop.permute.xlu0 %1171  ;;  %v1114_v38 = vpop.permute.xlu1 %1113 }
 0x1dc   : > { %v1284_v41 = vsel %vm1283_vm14, %v1267_v42, %v1172_v14  ;;  %v1270_v56 = vsel %vm749_vm9, %v4141_v39, %v1114_v38 }
 0x1dd   : > { %v1301_v17 = vsel %vm1300_vm15, %v1284_v41, %v1220_v12 }
 0x1de   : > { %v1318_v44 = vsel %vm1317_vm0, %v1301_v17, 1.0 }
 0x1df   : > { %3450 = vmatprep.mubr.msk.f32.mxu1 %vm1336_vm3, %v1318_v44  ;;  %v1112_v63 = vpop.permute.xlu0 %1111  ;;  %v1174_v1 = vpop.permute.xlu1 %1173 }
 0x1e0   : > { %v1285_v33 = vsel %vm1283_vm14, %v1268_v23, %v1174_v1  ;;  %v1269_v43 = vsel %vm749_vm9, %v4144_v40, %v1112_v63 }
 0x1e1   : > { %v1302_v45 = vsel %vm1300_vm15, %v1285_v33, %v1222_v11 }
 0x1e2   : > { %v1319_v48 = vsel %vm1317_vm0, %v1302_v45, 1.0 }
 0x1e3   : > { %v1176_v46 = vpop.permute.xlu0 %1175  ;;  %3451 = vmatmul.mubr.msk.f32.vlgmr.msra.gmra.mrb[0].mxu1 %vm1336_vm3, %v1319_v48  ;;  %v1118_v9 = vpop.permute.xlu1 %1117 }
 0x1e4   : > { %v1286_v54 = vsel %vm1283_vm14, %v1269_v43, %v1176_v46  ;;  %v1272_v11 = vsel %vm749_vm9, %v4153_v51, %v1118_v9 }
 0x1e5   : > { %v1303_v32 = vsel %vm1300_vm15, %v1286_v54, %v1224_v2 }
 0x1e6   : > { %v1320_v55 = vsel %vm1317_vm0, %v1303_v32, 1.0 }
 0x1e7   : > { %3453 = vmatprep.mubr.msk.f32.mxu1 %vm1336_vm3, %v1320_v55  ;;  %v1116_v57 = vpop.permute.xlu0 %1115  ;;  %v1178_v58 = vpop.permute.xlu1 %1177 }
 0x1e8   : > { %v1287_v25 = vsel %vm1283_vm14, %v1270_v56, %v1178_v58  ;;  %v1271_v61 = vsel %vm749_vm9, %v4156_v52, %v1116_v57 }
 0x1e9   : > { %v1304_v40 = vsel %vm1300_vm15, %v1287_v25, %v1226_v15 }
 0x1ea   : > { %v1321_v60 = vsel %vm1317_vm0, %v1304_v40, 1.0 }
 0x1eb   : > { %v1180_v62 = vpop.permute.xlu0 %1179  ;;  %3454 = vmatmul.mubr.msk.f32.gmra.mrb[2].mxu1 %vm1336_vm3, %v1321_v60  ;;  %v1122_v18 = vpop.permute.xlu1 %1121 }
 0x1ec   : > { %v1288_v8 = vsel %vm1283_vm14, %v1271_v61, %v1180_v62  ;;  %v1274_v44 = vsel %vm749_vm9, %v4165_v0, %v1122_v18 }
 0x1ed   : > { %v1305_v39 = vsel %vm1300_vm15, %v1288_v8, %v1228_v36 }
 0x1ee   : > { %v1322_v10 = vsel %vm1317_vm0, %v1305_v39, 1.0 }
 0x1ef   : > { %3456 = vmatprep.mubr.msk.f32.mxu1 %vm1336_vm3, %v1322_v10  ;;  %v1120_v12 = vpop.permute.xlu0 %1119  ;;  %v1182_v15 = vpop.permute.xlu1 %1181 }
 0x1f0   : > { %v1289_v2 = vsel %vm1283_vm14, %v1272_v11, %v1182_v15  ;;  %v1273_v21 = vsel %vm749_vm9, %v4168_v4, %v1120_v12 }
 0x1f1   : > { %v1306_v52 = vsel %vm1300_vm15, %v1289_v2, %v1230_v16  ;;  %v1083_v16 = vsel %vm4063_vm10, 0.0, %v4180_v22 }
 0x1f2   : > { %v1323_v31 = vsel %vm1317_vm0, %v1306_v52, 1.0 }
 0x1f3   : > { %v1184_v34 = vpop.permute.xlu0 %1183  ;;  %3457 = vmatmul.mubr.msk.f32.gmra.mrb[4].mxu1 %vm1336_vm3, %v1323_v31  ;;  %v1126_v42 = vpop.permute.xlu1 %1125 }
 0x1f4   : > { %v1290_v36 = vsel %vm1283_vm14, %v1273_v21, %v1184_v34  ;;  %v1276_v33 = vsel %vm749_vm9, %v4177_v20, %v1126_v42 }
 0x1f5   : > { %v1307_v51 = vsel %vm1300_vm15, %v1290_v36, %v1232_v28 }
 0x1f6   : > { %v1324_v3 = vsel %vm1317_vm0, %v1307_v51, 1.0 }
 0x1f7   : > { %3459 = vmatprep.mubr.msk.f32.mxu1 %vm1336_vm3, %v1324_v3  ;;  %v1124_v14 = vpop.permute.xlu0 %1123 }
 0x1f8   : > { %v1275_v4 = vsel %vm749_vm9, %v1083_v16, %v1124_v14 }
 0x1fb   : > { %v1188_v38 = vpop.permute.xlu0 %1187  ;;  %v1130_v41 = vpop.permute.xlu1 %1129 }
 0x1fc   : > { %v1292_v17 = vsel %vm1283_vm14, %v1275_v4, %v1188_v38  ;;  %v1278_v55 = vsel %vm749_vm9, %v4190_v35, %v1130_v41  ;;  %v1773_v38 = vld [vmem:[%s5149_s3] sm:$0xff]  ;;  %v1774_v41 = vld [vmem:[%s5149_s3 + $0x8] sm:$0x1f] }
 0x1fd   : > { %v1309_v63 = vsel %vm1300_vm15, %v1292_v17, %v4235_v59  ;;  %v3557_v4 = vpack.c.bf16 %v1774_v41, %v1773_v38 }
 0x1fe   : > { %v1326_v43 = vsel %vm1317_vm0, %v1309_v63, 1.0 }
 0x1ff   : > { %v1186_v28 = vpop.permute.xlu1 %1185  ;;  %v1128_v23 = vpop.permute.xlu0 %1127  ;;  %3559 = vmatprep.subr.msk.bf16.mxu0 %vm4369_vm5, %v3557_v4 }
 0x200   : > { %v1291_v1 = vsel %vm1283_vm14, %v1274_v44, %v1186_v28  ;;  %v1277_v45 = vsel %vm749_vm9, %v4193_v37, %v1128_v23  ;;  %3562 = vmatpush3.bf16.msk.msra.mxu0 %vm4369_vm5, %v3557_v4 }
 0x201   : > { %v1308_v26 = vsel %vm1300_vm15, %v1291_v1, %v4231_v27 }
 0x202   : > { %v1325_v22 = vsel %vm1317_vm0, %v1308_v26, 1.0 }
 0x203   : > { %3460 = vmatmul.mubr.msk.f32.gmra.mrb[6].mxu1 %vm1336_vm3, %v1325_v22  ;;  %v1192_v0 = vpop.permute.xlu0 %1191  ;;  %v1190_v48 = vpop.permute.xlu1 %1189 }
 0x204   : > { %v1294_v59 = vsel %vm1283_vm14, %v1277_v45, %v1192_v0  ;;  %v1293_v46 = vsel %vm1283_vm14, %v1276_v33, %v1190_v48  ;;  %3462 = vmatprep.mubr.msk.f32.mxu1 %vm1336_vm3, %v1326_v43 }
 0x205   : > { %v1311_v27 = vsel %vm1300_vm15, %v1294_v59, %v4239_v49  ;;  %v1310_v20 = vsel %vm1300_vm15, %v1293_v46, %v4233_v6 }
 0x206   : > { %v1327_v37 = vsel %vm1317_vm0, %v1310_v20, 1.0  ;;  %v1328_v9 = vsel %vm1317_vm0, %v1311_v27, 1.0 }
 0x207   : > { %3463 = vmatmul.mubr.msk.f32.gmra.mrb[8].mxu1 %vm1336_vm3, %v1327_v37  ;;  %v1134_v54 = vpop.permute.xlu1 %1133  ;;  %v1132_v32 = vpop.permute.xlu0 %1131 }
 0x208   : > { %3465 = vmatprep.mubr.msk.f32.mxu1 %vm1336_vm3, %v1328_v9  ;;  %v1279_v56 = vsel %vm749_vm9, %v4205_v50, %v1132_v32  ;;  %v1280_v62 = vsel %vm749_vm9, %v4202_v47, %v1134_v54 }
 0x20b   : > { %v1196_v49 = vpop.permute.xlu0 %1195  ;;  %v1194_v57 = vpop.permute.xlu1 %1193 }
 0x20c   : > { %v1296_v6 = vsel %vm1283_vm14, %v1279_v56, %v1196_v49  ;;  %v1295_v58 = vsel %vm1283_vm14, %v1278_v55, %v1194_v57 }
 0x20d   : > { %v1313_v25 = vsel %vm1300_vm15, %v1296_v6, %v4243_v53  ;;  %v1312_v40 = vsel %vm1300_vm15, %v1295_v58, %v4237_v29  ;;  %v4406_v58 = vadd.s32 24, %v3861_v19 }
 0x20e   : > { %v1329_v60 = vsel %vm1317_vm0, %v1312_v40, 1.0  ;;  %v1330_v61 = vsel %vm1317_vm0, %v1313_v25, 1.0 }
 0x20f   : > { %3466 = vmatmul.mubr.msk.f32.gmra.mrb[10].mxu1 %vm1336_vm3, %v1329_v60  ;;  %v1138_v35 = vpop.permute.xlu1 %1137  ;;  %v1136_v50 = vpop.permute.xlu0 %1135 }
 0x210   : > { %3468 = vmatprep.mubr.msk.f32.mxu1 %vm1336_vm3, %v1330_v61  ;;  %v1281_v39 = vsel %vm749_vm9, %v4219_v7, %v1136_v50  ;;  %v1282_v52 = vsel %vm749_vm9, %v4214_v5, %v1138_v35 }
 0x213   : > { %v1200_v18 = vpop.permute.xlu0 %1199  ;;  %v1198_v8 = vpop.permute.xlu1 %1197 }
 0x214   : > { %v1297_v53 = vsel %vm1283_vm14, %v1280_v62, %v1198_v8  ;;  %v1298_v11 = vsel %vm1283_vm14, %v1281_v39, %v1200_v18  ;;  %v1656_v18 = vand.u32 31, %v4406_v58 }
 0x215   : > { %v1314_v29 = vsel %vm1300_vm15, %v1297_v53, %v4241_v30 }
 0x216   : > { %v1331_v10 = vsel %vm1317_vm0, %v1314_v29, 1.0  ;;  %vm4422_vm7 = vcmp.eq.s32.totalorder %v1656_v18, 31 }
 0x217   : > { %v1248_v12 = vpop.permute.xlu0 %1247  ;;  %3469 = vmatmul.mubr.msk.f32.gmra.mrb[12].mxu1 %vm1336_vm3, %v1331_v10  ;;  %v1202_v15 = vpop.permute.xlu1 %1201 }
 0x218   : > { %v1315_v47 = vsel %vm1300_vm15, %v1298_v11, %v1248_v12  ;;  %v1299_v30 = vsel %vm1283_vm14, %v1282_v52, %v1202_v15 }
 0x219   : > { %v1332_v2 = vsel %vm1317_vm0, %v1315_v47, 1.0 }
 0x21a   : > { %3471 = vmatprep.mubr.msk.f32.mxu1 %vm1336_vm3, %v1332_v2 }
 0x21b   : > { %v1250_v7 = vpop.permute.xlu1 %1249 }
 0x21c   : > { %v1316_v31 = vsel %vm1300_vm15, %v1299_v30, %v1250_v7 }
 0x21d   : > { %v1333_v21 = vsel %vm1317_vm0, %v1316_v31, 1.0 }
 0x21e   : > { %3472 = vmatmul.mubr.msk.f32.gmra.mrb[14].mxu1 %vm1336_vm3, %v1333_v21  ;;  %vm4700_vm3 = vmpackc.low %vm390_vm2, %vm3730_vm12 }
 0x2b6   : > { %v3452_v34 = vpop.f32.mrb[0].mxu1 }
 0x2b7   : > { %1535 = vst.msk [vmem:[#allocation2 + $0x8] sm:$0xff] %vm749_vm9, %v3452_v34  ;;  %v1455_v36 = vpop.f32.mrb[1].mxu1 }
 0x2b8   : > { %1534 = vst.msk [vmem:[#allocation2] sm:$0xff] %vm749_vm9, %v1455_v36 }
 0x2be   : > { %v3455_v51 = vpop.f32.mrb[2].mxu1 }
 0x2bf   : > { %1537 = vst.msk [vmem:[#allocation2 + $0x18] sm:$0xff] %vm749_vm9, %v3455_v51  ;;  %v1465_v5 = vpop.f32.mrb[3].mxu1  ;;  %v1550_v3 = vld [vmem:[#allocation2] ss:$2 sm:$0xff]  ;;  %v1566_v42 = vld [vmem:[#allocation2 + $0x1] ss:$2 sm:$0xff] }
 0x2c0   : > { %1536 = vst.msk [vmem:[#allocation2 + $0x10] sm:$0xff] %vm749_vm9, %v1465_v5  ;;  %v1581_v14 = vadd.f32 %v1566_v42, %v1550_v3 }
 0x2c2   : > { %v4358_v16 = vmul.f32 0.5, %v1581_v14 }
 0x2c4   : > { %1693 = vrot.lane.b32.xlu0 %v4358_v16, %s3731_s28  ;;  %v1629_v22 = vrot.slane %v4358_v16, 1 }
 0x2c6   : > { %v3458_v44 = vpop.f32.mrb[4].mxu1 }
 0x2c7   : > { %1539 = vst.msk [vmem:[#allocation2 + $0x28] sm:$0xff] %vm749_vm9, %v3458_v44  ;;  %v1475_v28 = vpop.f32.mrb[5].mxu1  ;;  %v1552_v23 = vld [vmem:[#allocation2 + $0x10] ss:$2 sm:$0xff]  ;;  %v1568_v63 = vld [vmem:[#allocation2 + $0x11] ss:$2 sm:$0xff] }
 0x2c8   : > { %1538 = vst.msk [vmem:[#allocation2 + $0x20] sm:$0xff] %vm749_vm9, %v1475_v28  ;;  %v1582_v1 = vadd.f32 %v1568_v63, %v1552_v23 }
 0x2ca   : > { %v4379_v26 = vmul.f32 0.5, %v1582_v1 }
 0x2cc   : > { %1695 = vrot.lane.b32.xlu1 %v4379_v26, %s3731_s28  ;;  %v1630_v33 = vrot.slane %v4379_v26, 1  ;;  %v1606_v27 = vrot.slane %v4379_v26, 7 }
 0x2ce   : > { %v1631_v45 = vsel %vm439_vm1, %v1629_v22, %v1630_v33 }
 0x2cf   : > { %1725 = vrot.lane.b32.xlu0 %v1631_v45, %s3732_s29  ;;  %v1554_v0 = vld [vmem:[#allocation2 + $0x20] ss:$2 sm:$0xff]  ;;  %v1570_v48 = vld [vmem:[#allocation2 + $0x21] ss:$2 sm:$0xff] }
 0x2d0   : > { %v1583_v43 = vadd.f32 %v1570_v48, %v1554_v0 }
 0x2d2   : > { %v4387_v59 = vmul.f32 0.5, %v1583_v43 }
 0x2d4   : > { %1697 = vrot.lane.b32.xlu0 %v4387_v59, %s3731_s28  ;;  %v1632_v46 = vrot.slane %v4387_v59, 1  ;;  %v1608_v20 = vrot.slane %v4387_v59, 7 }
 0x2d6   : > { %v3461_v37 = vpop.f32.mrb[6].mxu1  ;;  %v1633_v9 = vsel %vm439_vm1, %v1630_v33, %v1632_v46  ;;  %v4398_v54 = vsel %vm390_vm2, %v1606_v27, %v1608_v20  ;;  %v1660_v33 = vand.u32 31, %v3876_v24 }
 0x2d7   : > { %1541 = vst.msk [vmem:[#allocation2 + $0x38] sm:$0xff] %vm749_vm9, %v3461_v37  ;;  %v1485_v32 = vpop.f32.mrb[7].mxu1  ;;  %1727 = vrot.lane.b32.xlu1 %v1633_v9, %s3732_s29  ;;  %v1653_v37 = vand.u32 31, %v3861_v19 }
 0x2d8   : > { %1540 = vst.msk [vmem:[#allocation2 + $0x30] sm:$0xff] %vm749_vm9, %v1485_v32  ;;  %vm4464_vm8 = vcmp.eq.s32.totalorder %v1660_v33, 31 }
 0x2d9   : > { %vm4488_vm10 = vcmp.eq.s32.totalorder %v1653_v37, 0 }
 0x2da   : > { %v3464_v55 = vpop.f32.mrb[8].mxu1 }
 0x2db   : > { %1543 = vst.msk [vmem:[#allocation2 + $0x48] sm:$0xff] %vm749_vm9, %v3464_v55  ;;  %v1495_v56 = vpop.f32.mrb[9].mxu1 }
 0x2dc   : > { %1542 = vst.msk [vmem:[#allocation2 + $0x40] sm:$0xff] %vm749_vm9, %v1495_v56 }
 0x2df   : > { %v1556_v49 = vld [vmem:[#allocation2 + $0x30] ss:$2 sm:$0xff]  ;;  %v1572_v57 = vld [vmem:[#allocation2 + $0x31] ss:$2 sm:$0xff] }
 0x2e0   : > { %v1584_v6 = vadd.f32 %v1572_v57, %v1556_v49 }
 0x2e2   : > { %v3467_v25 = vpop.f32.mrb[10].mxu1  ;;  %v4408_v40 = vmul.f32 0.5, %v1584_v6 }
 0x2e3   : > { %1545 = vst.msk [vmem:[#allocation2 + $0x58] sm:$0xff] %vm749_vm9, %v3467_v25  ;;  %v1505_v60 = vpop.f32.mrb[11].mxu1  ;;  %v1558_v61 = vld [vmem:[#allocation2 + $0x40] ss:$2 sm:$0xff]  ;;  %v1574_v35 = vld [vmem:[#allocation2 + $0x41] ss:$2 sm:$0xff] }
 0x2e4   : > { %1544 = vst.msk [vmem:[#allocation2 + $0x50] sm:$0xff] %vm749_vm9, %v1505_v60  ;;  %1699 = vrot.lane.b32.xlu1 %v4408_v40, %s3731_s28  ;;  %v1634_v50 = vrot.slane %v4408_v40, 1  ;;  %v1585_v62 = vadd.f32 %v1574_v35, %v1558_v61  ;;  %v1610_v8 = vrot.slane %v4408_v40, 7 }
 0x2e6   : > { %v1635_v53 = vsel %vm439_vm1, %v1632_v46, %v1634_v50  ;;  %v1593_v29 = vmul.f32 0.5, %v1585_v62  ;;  %v4419_v39 = vsel %vm390_vm2, %v1608_v20, %v1610_v8  ;;  %v1605_v20 = vrot.slane %v4358_v16, 7 }
 0x2e7   : > { %1729 = vrot.lane.b32.xlu0 %v1635_v53, %s3732_s29 }
 0x2e8   : > { %v1636_v10 = vrot.slane %v1593_v29, 1  ;;  %v1612_v12 = vrot.slane %v1593_v29, 7  ;;  %v1628_v9 = vsel %vm390_vm2, 0.0, %v1605_v20  ;;  %v1607_v25 = vsel %vm390_vm2, %v1605_v20, %v1606_v27 }
 0x2ea   : > { %v3470_v15 = vpop.f32.mrb[12].mxu1  ;;  %v1637_v47 = vsel %vm439_vm1, %v1634_v50, %v1636_v10  ;;  %v4428_v2 = vsel %vm390_vm2, %v1610_v8, %v1612_v12  ;;  %v493_v8 = vadd.s32 32, %v3861_v19 }
 0x2eb   : > { %1547 = vst.msk [vmem:[#allocation2 + $0x68] sm:$0xff] %vm749_vm9, %v3470_v15  ;;  %1701 = vrot.lane.b32.xlu0 %v1593_v29, %s3731_s28  ;;  %v1515_v52 = vpop.f32.mrb[13].mxu1  ;;  %v1688_v30 = vsel %vm4422_vm7, 0.0, %v1637_v47  ;;  %v1560_v7 = vld [vmem:[#allocation2 + $0x50] ss:$2 sm:$0xff] }
 0x2ec   : > { %v1576_v31 = vld [vmem:[#allocation2 + $0x51] ss:$2 sm:$0xff]  ;;  %1546 = vst.msk [vmem:[#allocation2 + $0x60] sm:$0xff] %vm749_vm9, %v1515_v52  ;;  %1731 = vrot.lane.b32.xlu1 %v1688_v30, %s3732_s29 }
 0x2ed   : > { %v1586_v21 = vadd.f32 %v1576_v31, %v1560_v7 }
 0x2ef   : > { %v4436_v34 = vmul.f32 0.5, %v1586_v21 }
 0x2f1   : > { %1703 = vrot.lane.b32.xlu1 %v4436_v34, %s3731_s28  ;;  %v1638_v36 = vrot.slane %v4436_v34, 1  ;;  %v1614_v51 = vrot.slane %v4436_v34, 7  ;;  %v3473_v5 = vpop.f32.mrb[14].mxu1 }
 0x2f2   : > { %1549 = vst.msk [vmem:[#allocation2 + $0x78] sm:$0xff] %vm749_vm9, %v3473_v5  ;;  %v1525_v3 = vpop.f32.mrb[15].mxu1 }
 0x2f3   : > { %v1639_v42 = vsel %vm439_vm1, %v1636_v10, %v1638_v36  ;;  %v4447_v14 = vsel %vm390_vm2, %v1612_v12, %v1614_v51  ;;  %1548 = vst.msk [vmem:[#allocation2 + $0x70] sm:$0xff] %vm749_vm9, %v1525_v3  ;;  %v1562_v38 = vld [vmem:[#allocation2 + $0x60] ss:$2 sm:$0xff]  ;;  %v1578_v41 = vld [vmem:[#allocation2 + $0x61] ss:$2 sm:$0xff] }
 0x2f4   : > { %1733 = vrot.lane.b32.xlu0 %v1639_v42, %s3732_s29  ;;  %v1587_v4 = vadd.f32 %v1578_v41, %v1562_v38 }
 0x2f6   : > { %v4451_v44 = vmul.f32 0.5, %v1587_v4 }
 0x2f8   : > { %1705 = vrot.lane.b32.xlu0 %v4451_v44, %s3731_s28  ;;  %v1640_v28 = vrot.slane %v4451_v44, 1  ;;  %v1616_v38 = vrot.slane %v4451_v44, 7 }
 0x2fa   : > { %v1641_v23 = vsel %vm439_vm1, %v1638_v36, %v1640_v28  ;;  %v1564_v63 = vld [vmem:[#allocation2 + $0x70] ss:$2 sm:$0xff]  ;;  %v1580_v1 = vld [vmem:[#allocation2 + $0x71] ss:$2 sm:$0xff] }
 0x2fb   : > { %1735 = vrot.lane.b32.xlu1 %v1641_v23, %s3732_s29  ;;  %v1588_v22 = vadd.f32 %v1580_v1, %v1564_v63  ;;  %v1617_v23 = vsel %vm390_vm2, %v1614_v51, %v1616_v38  ;;  %v2104_v51 = vld [vmem:[%s5150_s4 + $0x8] sm:$0xff] }
 0x2fd   : > { %v4459_v45 = vmul.f32 0.5, %v1588_v22 }
 0x2ff   : > { %1707 = vrot.lane.b32.xlu1 %v4459_v45, %s3731_s28  ;;  %v1642_v0 = vrot.slane %v4459_v45, 1  ;;  %v1618_v4 = vrot.slane %v4459_v45, 7 }
 0x301   : > { %v1643_v43 = vsel %vm439_vm1, %v1640_v28, %v1642_v0  ;;  %v1652_v46 = vsel %vm439_vm1, %v1642_v0, 0.0 }
 0x302   : > { %1737 = vrot.lane.b32.xlu0 %v1643_v43, %s3732_s29  ;;  %v1692_v24 = vsel %vm4464_vm8, 0.0, %v1652_v46 }
 0x303   : > { %1739 = vrot.lane.b32.xlu1 %v1692_v24, %s3732_s29 }
 0x306   : > { %2044 = vrot.lane.b32.xlu0 %v4358_v16, %s3733_s16 }
 0x307   : > { %2046 = vrot.lane.b32.xlu1 %v4379_v26, %s3733_s16 }
 0x30a   : > { %2048 = vrot.lane.b32.xlu0 %v4387_v59, %s3733_s16  ;;  %v1669_v59 = vsel %vm4488_vm10, 0.0, %v1628_v9 }
 0x30b   : > { %2050 = vrot.lane.b32.xlu1 %v4408_v40, %s3733_s16 }
 0x30e   : > { %2052 = vrot.lane.b32.xlu0 %v1593_v29, %s3733_s16  ;;  %v1657_v29 = vand.u32 31, %v493_v8 }
 0x30f   : > { %2054 = vrot.lane.b32.xlu1 %v4436_v34, %s3733_s16  ;;  %v2103_v34 = vld [vmem:[%s5150_s4] sm:$0xff] }
 0x310   : > { %vm4515_vm11 = vcmp.eq.s32.totalorder %v1657_v29, 0  ;;  %v3563_v20 = vpack.c.bf16 %v2104_v51, %v2103_v34 }
 0x311   : > { %v1673_v30 = vsel %vm4515_vm11, 0.0, %v4428_v2 }
 0x312   : > { %3564 = vmatprep.subr.bf16.mxu0 %v3563_v20 }
 0x336   : > { %v1694_v55 = vpop.permute.xlu0 %1693 }
 0x337   : > { %v1749_v56 = vsel %vm749_vm9, %v1669_v59, %v1694_v55 }
 0x33e   : > { %v1696_v16 = vpop.permute.xlu1 %1695 }
 0x33f   : > { %v1750_v40 = vsel %vm749_vm9, %v1607_v25, %v1696_v16 }
 0x341   : > { %v1726_v49 = vpop.permute.xlu0 %1725 }
 0x342   : > { %v1757_v57 = vsel %vm1283_vm14, %v1749_v56, %v1726_v49 }
 0x343   : > { %v1765_v6 = vsel %vm1300_vm15, %v1757_v57, 1.0 }
 0x344   : > { %3478 = vmatprep.mubr.msk.f32.mxu0 %vm1317_vm0, %v1765_v6 }
 0x346   : > { %v1698_v50 = vpop.permute.xlu0 %1697 }
 0x347   : > { %v1751_v62 = vsel %vm749_vm9, %v4398_v54, %v1698_v50 }
 0x349   : > { %v1728_v60 = vpop.permute.xlu1 %1727 }
 0x34a   : > { %v1758_v61 = vsel %vm1283_vm14, %v1750_v40, %v1728_v60  ;;  %v2105_v40 = vld [vmem:[%s5150_s4 + $0x10] sm:$0xff]  ;;  %v2106_v60 = vld [vmem:[%s5150_s4 + $0x18] sm:$0x1f] }
 0x34b   : > { %v1766_v35 = vsel %vm1300_vm15, %v1758_v61, 1.0  ;;  %v3567_v61 = vpack.c.bf16 %v2106_v60, %v2105_v40 }
 0x34c   : > { %3479 = vmatmul.mubr.msk.f32.vlgmr.msra.gmra.mrb[16].mxu0 %vm1317_vm0, %v1766_v35 }
 0x34d   : > { %3566 = vmatpush3.bf16.msra.mxu0 %v3563_v20 }
 0x34e   : > { %3569 = vmatprep.subr.msk.bf16.mxu0 %vm4369_vm5, %v3567_v61 }
 0x351   : > { %3572 = vmatpush3.bf16.msk.msra.mxu0 %vm4369_vm5, %v3567_v61 }
 0x356   : > { %v1700_v53 = vpop.permute.xlu1 %1699 }
 0x357   : > { %v1752_v10 = vsel %vm749_vm9, %v4419_v39, %v1700_v53 }
 0x359   : > { %v1730_v18 = vpop.permute.xlu0 %1729 }
 0x35a   : > { %v1759_v26 = vsel %vm1283_vm14, %v1751_v62, %v1730_v18 }
 0x35b   : > { %v1767_v27 = vsel %vm1300_vm15, %v1759_v26, 1.0 }
 0x35c   : > { %3481 = vmatprep.mubr.msk.f32.mxu0 %vm1317_vm0, %v1767_v27 }
 0x35d   : > { %v1702_v52 = vpop.permute.xlu0 %1701 }
 0x35e   : > { %v1732_v12 = vpop.permute.xlu1 %1731  ;;  %v1753_v7 = vsel %vm749_vm9, %v1673_v30, %v1702_v52 }
 0x35f   : > { %v1760_v15 = vsel %vm1283_vm14, %v1752_v10, %v1732_v12 }
 0x360   : > { %v1768_v47 = vsel %vm1300_vm15, %v1760_v15, 1.0 }
 0x361   : > { %3482 = vmatmul.mubr.msk.f32.gmra.mrb[18].mxu0 %vm1317_vm0, %v1768_v47 }
 0x363   : > { %v1704_v36 = vpop.permute.xlu1 %1703 }
 0x364   : > { %v1754_v5 = vsel %vm749_vm9, %v4447_v14, %v1704_v36  ;;  %v1619_v14 = vsel %vm390_vm2, %v1616_v38, %v1618_v4 }
 0x366   : > { %v1734_v31 = vpop.permute.xlu0 %1733 }
 0x367   : > { %v1761_v39 = vsel %vm1283_vm14, %v1753_v7, %v1734_v31 }
 0x368   : > { %v1769_v21 = vsel %vm1300_vm15, %v1761_v39, 1.0 }
 0x369   : > { %3484 = vmatprep.mubr.msk.f32.mxu0 %vm1317_vm0, %v1769_v21 }
 0x36a   : > { %v1706_v41 = vpop.permute.xlu0 %1705 }
 0x36b   : > { %v1755_v63 = vsel %vm749_vm9, %v1617_v23, %v1706_v41 }
 0x36d   : > { %v1736_v3 = vpop.permute.xlu1 %1735 }
 0x36e   : > { %v1762_v42 = vsel %vm1283_vm14, %v1754_v5, %v1736_v3 }
 0x36f   : > { %v1770_v2 = vsel %vm1300_vm15, %v1762_v42, 1.0 }
 0x370   : > { %3485 = vmatmul.mubr.msk.f32.gmra.mrb[20].mxu0 %vm1317_vm0, %v1770_v2 }
 0x371   : > { %v1708_v28 = vpop.permute.xlu1 %1707 }
 0x372   : > { %v1756_v22 = vsel %vm749_vm9, %v1619_v14, %v1708_v28  ;;  %vm2076_vm9 = vcmask 130048  }
 0x374   : > { %v1738_v1 = vpop.permute.xlu0 %1737 }
 0x375   : > { %v1763_v33 = vsel %vm1283_vm14, %v1755_v63, %v1738_v1  ;;  %v1740_v0 = vpop.permute.xlu1 %1739 }
 0x376   : > { %v1771_v43 = vsel %vm1300_vm15, %v1763_v33, 1.0  ;;  %v1764_v46 = vsel %vm1283_vm14, %v1756_v22, %v1740_v0 }
 0x377   : > { %v1772_v24 = vsel %vm1300_vm15, %v1764_v46, 1.0  ;;  %3487 = vmatprep.mubr.msk.f32.mxu0 %vm1317_vm0, %v1771_v43  ;;  %vm2094_vm15 = vcmask 228352  }
 0x378   : > { %3488 = vmatmul.mubr.msk.f32.gmra.mrb[22].mxu0 %vm1317_vm0, %v1772_v24  ;;  %v2045_v24 = vpop.permute.xlu0 %2044  ;;  %vm2107_vm0 = vcmask 236544  }
 0x379   : > { %v2047_v20 = vpop.permute.xlu1 %2046 }
 0x37c   : > { %v2049_v34 = vpop.permute.xlu0 %2048 }
 0x380   : > { %v2053_v51 = vpop.permute.xlu0 %2052 }
 0x41f   : > { %v3480_v37 = vpop.f32.mrb[16].mxu0 }
 0x420   : > { %v1909_v9 = vmax.f32 %v3480_v37, 0.0  ;;  %v1869_v55 = vpop.f32.mrb[17].mxu0 }
 0x421   : > { %v4552_v59 = vmax.f32 %v1869_v55, 0.0 }
 0x422   : > { %v1925_v56 = vrot.slane %v1909_v9, 7  ;;  %v1949_v49 = vrot.slane %v1909_v9, 1  ;;  %1990 = vrot.lane.b32.xlu1 %v1909_v9, %s3732_s29 }
 0x423   : > { %v1924_v57 = vrot.slane %v4552_v59, 7  ;;  %v1948_v6 = vrot.slane %v4552_v59, 1  ;;  %1988 = vrot.lane.b32.xlu0 %v4552_v59, %s3732_s29 }
 0x425   : > { %v1950_v16 = vsel %vm439_vm1, %v1948_v6, %v1949_v49  ;;  %v4563_v25 = vsel %vm390_vm2, %v1924_v57, %v1925_v56  ;;  %v1947_v37 = vsel %vm390_vm2, 0.0, %v1924_v57 }
 0x426   : > { %v1972_v48 = vsel %vm4488_vm10, 0.0, %v1947_v37  ;;  %vm2558_vm10 = vcmask 457728  }
 0x427   : > { %2020 = vrot.lane.b32.xlu0 %v1950_v16, %s3734_s21 }
 0x434   : > { %v3483_v35 = vpop.f32.mrb[18].mxu0 }
 0x435   : > { %v1911_v50 = vmax.f32 %v3483_v35, 0.0  ;;  %v1879_v62 = vpop.f32.mrb[19].mxu0 }
 0x436   : > { %v1910_v18 = vmax.f32 %v1879_v62, 0.0 }
 0x437   : > { %v1929_v8 = vrot.slane %v1911_v50, 7  ;;  %v1953_v53 = vrot.slane %v1911_v50, 1  ;;  %1994 = vrot.lane.b32.xlu1 %v1911_v50, %s3732_s29 }
 0x438   : > { %v1927_v26 = vrot.slane %v1910_v18, 7  ;;  %v1951_v27 = vrot.slane %v1910_v18, 1  ;;  %1992 = vrot.lane.b32.xlu0 %v1910_v18, %s3732_s29 }
 0x43a   : > { %v1952_v29 = vsel %vm439_vm1, %v1949_v49, %v1951_v27  ;;  %v1954_v10 = vsel %vm439_vm1, %v1951_v27, %v1953_v53  ;;  %v4581_v12 = vsel %vm390_vm2, %v1927_v26, %v1929_v8  ;;  %v4584_v17 = vsel %vm390_vm2, %v1925_v56, %v1927_v26  ;;  %v2051_v56 = vpop.permute.xlu1 %2050 }
 0x43b   : > { %2022 = vrot.lane.b32.xlu1 %v1952_v29, %s3734_s21 }
 0x43c   : > { %2024 = vrot.lane.b32.xlu0 %v1954_v10, %s3734_s21 }
 0x43e   : > { %v2055_v57 = vpop.permute.xlu1 %2054 }
 0x443   : > { %v3486_v15 = vpop.f32.mrb[20].mxu0 }
 0x444   : > { %v1913_v47 = vmax.f32 %v3486_v15, 0.0  ;;  %v1889_v52 = vpop.f32.mrb[21].mxu0 }
 0x445   : > { %v1912_v30 = vmax.f32 %v1889_v52, 0.0 }
 0x446   : > { %v1933_v7 = vrot.slane %v1913_v47, 7  ;;  %v1957_v31 = vrot.slane %v1913_v47, 1  ;;  %1998 = vrot.lane.b32.xlu1 %v1913_v47, %s3732_s29 }
 0x447   : > { %v1931_v39 = vrot.slane %v1912_v30, 7  ;;  %v1955_v21 = vrot.slane %v1912_v30, 1  ;;  %1996 = vrot.lane.b32.xlu0 %v1912_v30, %s3732_s29 }
 0x449   : > { %v1956_v36 = vsel %vm439_vm1, %v1953_v53, %v1955_v21  ;;  %v1958_v5 = vsel %vm439_vm1, %v1955_v21, %v1957_v31  ;;  %v4593_v3 = vsel %vm390_vm2, %v1931_v39, %v1933_v7  ;;  %v4596_v42 = vsel %vm390_vm2, %v1929_v8, %v1931_v39 }
 0x44a   : > { %v1983_v38 = vsel %vm4422_vm7, 0.0, %v1956_v36  ;;  %v1976_v29 = vsel %vm4515_vm11, 0.0, %v4596_v42  ;;  %vm2363_vm7 = vcmask 203776   ;;  %vm2571_vm11 = vcmask 465920  }
 0x44b   : > { %2026 = vrot.lane.b32.xlu1 %v1983_v38, %s3734_s21  ;;  %2028 = vrot.lane.b32.xlu0 %v1958_v5, %s3734_s21  ;;  %v3489_v2 = vpop.f32.mrb[22].mxu0 }
 0x44c   : > { %v1915_v41 = vmax.f32 %v3489_v2, 0.0  ;;  %v1899_v4 = vpop.f32.mrb[23].mxu0 }
 0x44d   : > { %v1914_v28 = vmax.f32 %v1899_v4, 0.0 }
 0x44e   : > { %v1937_v23 = vrot.slane %v1915_v41, 7  ;;  %v1961_v63 = vrot.slane %v1915_v41, 1 }
 0x44f   : > { %v1935_v14 = vrot.slane %v1914_v28, 7  ;;  %v1959_v1 = vrot.slane %v1914_v28, 1  ;;  %2002 = vrot.lane.b32.xlu1 %v1915_v41, %s3732_s29  ;;  %2000 = vrot.lane.b32.xlu0 %v1914_v28, %s3732_s29 }
 0x450   : > { %v1971_v43 = vsel %vm439_vm1, %v1961_v63, 0.0 }
 0x451   : > { %v1962_v22 = vsel %vm439_vm1, %v1959_v1, %v1961_v63  ;;  %v1960_v11 = vsel %vm439_vm1, %v1957_v31, %v1959_v1  ;;  %v4607_v33 = vsel %vm390_vm2, %v1935_v14, %v1937_v23  ;;  %v4610_v0 = vsel %vm390_vm2, %v1933_v7, %v1935_v14 }
 0x452   : > { %v1987_v46 = vsel %vm4464_vm8, 0.0, %v1971_v43 }
 0x453   : > { %2032 = vrot.lane.b32.xlu0 %v1962_v22, %s3734_s21  ;;  %2030 = vrot.lane.b32.xlu1 %v1960_v11, %s3734_s21 }
 0x457   : > { %2056 = vrot.lane.b32.xlu0 %v4451_v44, %s3733_s16  ;;  %2034 = vrot.lane.b32.xlu1 %v1987_v46, %s3734_s21 }
 0x45b   : > { %2058 = vrot.lane.b32.xlu1 %v4459_v45, %s3733_s16 }
 0x494   : > { %v1991_v6 = vpop.permute.xlu1 %1990 }
 0x495   : > { %v1989_v9 = vpop.permute.xlu0 %1988  ;;  %v2069_v40 = vsel %vm1283_vm14, %v4563_v25, %v1991_v6 }
 0x496   : > { %v2068_v44 = vsel %vm1283_vm14, %v1972_v48, %v1989_v9  ;;  %v2359_v48 = vld [vmem:[%s5151_s5] sm:$0xff] }
 0x499   : > { %v2021_v55 = vpop.permute.xlu0 %2020 }
 0x49a   : > { %v2077_v45 = vsel %vm2076_vm9, %v2068_v44, %v2021_v55  ;;  %v2360_v44 = vld [vmem:[%s5151_s5 + $0x8] sm:$0xff] }
 0x49b   : > { %v2086_v49 = vsel %vm2085_vm13, %v2077_v45, %v2045_v24  ;;  %v3573_v55 = vpack.c.bf16 %v2360_v44, %v2359_v48 }
 0x49c   : > { %v2095_v59 = vsel %vm2094_vm15, %v2086_v49, 1.0 }
 0x49d   : > { %3498 = vmatprep.mubr.msk.f32.mxu0 %vm2107_vm0, %v2095_v59  ;;  %3574 = vmatprep.subr.bf16.mxu0 %v3573_v55 }
 0x4a9   : > { %v1995_v16 = vpop.permute.xlu1 %1994 }
 0x4aa   : > { %v1993_v32 = vpop.permute.xlu0 %1992  ;;  %v2071_v10 = vsel %vm1283_vm14, %v4581_v12, %v1995_v16  ;;  %v2362_v16 = vld [vmem:[%s5151_s5 + $0x18] sm:$0x1] }
 0x4ab   : > { %v2070_v61 = vsel %vm1283_vm14, %v4584_v17, %v1993_v32 }
 0x4ad   : > { %v2023_v60 = vpop.permute.xlu1 %2022 }
 0x4ae   : > { %v2078_v35 = vsel %vm2076_vm9, %v2069_v40, %v2023_v60  ;;  %v2025_v50 = vpop.permute.xlu0 %2024 }
 0x4af   : > { %v2087_v62 = vsel %vm2085_vm13, %v2078_v35, %v2047_v20  ;;  %v2079_v18 = vsel %vm2076_vm9, %v2070_v61, %v2025_v50  ;;  %v490_v61 = vadd.s32 8, %v3861_v19 }
 0x4b0   : > { %v2096_v8 = vsel %vm2094_vm15, %v2087_v62, 1.0  ;;  %v2088_v53 = vsel %vm2085_vm13, %v2079_v18, %v2049_v34 }
 0x4b1   : > { %3499 = vmatmul.mubr.msk.f32.vlgmr.msra.gmra.mrb[24].mxu0 %vm2107_vm0, %v2096_v8  ;;  %v2097_v26 = vsel %vm2094_vm15, %v2088_v53, 1.0 }
 0x4b2   : > { %3501 = vmatprep.mubr.msk.f32.mxu0 %vm2107_vm0, %v2097_v26  ;;  %3576 = vmatpush3.bf16.msra.mxu0 %v3573_v55 }
 0x4b8   : > { %v1999_v25 = vpop.permute.xlu1 %1998 }
 0x4b9   : > { %v1997_v27 = vpop.permute.xlu0 %1996  ;;  %v2073_v36 = vsel %vm1283_vm14, %v4593_v3, %v1999_v25 }
 0x4ba   : > { %v2072_v17 = vsel %vm1283_vm14, %v1976_v29, %v1997_v27 }
 0x4bd   : > { %v2027_v15 = vpop.permute.xlu1 %2026  ;;  %v2029_v47 = vpop.permute.xlu0 %2028 }
 0x4be   : > { %v2080_v52 = vsel %vm2076_vm9, %v2071_v10, %v2027_v15  ;;  %v2081_v30 = vsel %vm2076_vm9, %v2072_v17, %v2029_v47  ;;  %v2300_v17 = vand.u32 15, %v490_v61  ;;  %v2565_v61 = vld [vmem:[%s5152_s6 + $0x10] sm:$0xff] }
 0x4bf   : > { %v2089_v7 = vsel %vm2085_vm13, %v2080_v52, %v2051_v56  ;;  %v2090_v31 = vsel %vm2085_vm13, %v2081_v30, %v2053_v51 }
 0x4c0   : > { %v2098_v39 = vsel %vm2094_vm15, %v2089_v7, 1.0  ;;  %v2099_v54 = vsel %vm2094_vm15, %v2090_v31, 1.0  ;;  %vm4727_vm12 = vcmp.eq.s32.totalorder %v2300_v17, 15 }
 0x4c1   : > { %3502 = vmatmul.mubr.msk.f32.gmra.mrb[26].mxu0 %vm2107_vm0, %v2098_v39  ;;  %v2003_v21 = vpop.permute.xlu1 %2002  ;;  %v2001_v12 = vpop.permute.xlu0 %2000 }
 0x4c2   : > { %3504 = vmatprep.mubr.msk.f32.mxu0 %vm2107_vm0, %v2099_v54  ;;  %v2074_v41 = vsel %vm1283_vm14, %v4610_v0, %v2001_v12  ;;  %v2075_v1 = vsel %vm1283_vm14, %v4607_v33, %v2003_v21  ;;  %v2302_v21 = vand.u32 15, %v4406_v58 }
 0x4c4   : > { %vm4739_vm4 = vcmp.eq.s32.totalorder %v2302_v21, 15 }
 0x4c5   : > { %v2033_v5 = vpop.permute.xlu0 %2032  ;;  %v2031_v42 = vpop.permute.xlu1 %2030 }
 0x4c6   : > { %v2082_v38 = vsel %vm2076_vm9, %v2073_v36, %v2031_v42  ;;  %v2083_v28 = vsel %vm2076_vm9, %v2074_v41, %v2033_v5 }
 0x4c7   : > { %v2091_v2 = vsel %vm2085_vm13, %v2082_v38, %v2055_v57  ;;  %v2361_v57 = vld [vmem:[%s5151_s5 + $0x10] sm:$0xff] }
 0x4c8   : > { %v2100_v4 = vsel %vm2094_vm15, %v2091_v2, 1.0  ;;  %v3577_v40 = vpack.c.bf16 %v2362_v16, %v2361_v57  ;;  %v2299_v2 = vand.u32 15, %v3861_v19 }
 0x4c9   : > { %v2057_v23 = vpop.permute.xlu0 %2056  ;;  %3505 = vmatmul.mubr.msk.f32.gmra.mrb[28].mxu0 %vm2107_vm0, %v2100_v4  ;;  %v2035_v63 = vpop.permute.xlu1 %2034 }
 0x4ca   : > { %v2092_v14 = vsel %vm2085_vm13, %v2083_v28, %v2057_v23  ;;  %v2084_v22 = vsel %vm2076_vm9, %v2075_v1, %v2035_v63  ;;  %3579 = vmatprep.subr.msk.bf16.mxu0 %vm4700_vm3, %v3577_v40  ;;  %vm4757_vm5 = vcmp.eq.s32.totalorder %v2299_v2, 0 }
 0x4cb   : > { %v2101_v3 = vsel %vm2094_vm15, %v2092_v14, 1.0  ;;  %3582 = vmatpush3.bf16.msk.msra.mxu0 %vm4700_vm3, %v3577_v40  ;;  %v2563_v40 = vld [vmem:[%s5152_s6] sm:$0xff] }
 0x4cc   : > { %3507 = vmatprep.mubr.msk.f32.mxu0 %vm2107_vm0, %v2101_v3 }
 0x4cd   : > { %v2059_v11 = vpop.permute.xlu1 %2058 }
 0x4ce   : > { %v2093_v0 = vsel %vm2085_vm13, %v2084_v22, %v2059_v11  ;;  %v491_v22 = vadd.s32 16, %v3861_v19 }
 0x4cf   : > { %v2102_v43 = vsel %vm2094_vm15, %v2093_v0, 1.0  ;;  %vm2764_vm15 = vcmask 654336  }
 0x4d0   : > { %3508 = vmatmul.mubr.msk.f32.gmra.mrb[30].mxu0 %vm2107_vm0, %v2102_v43  ;;  %v2301_v0 = vand.u32 15, %v491_v22  ;;  %vm2766_vm0 = vcmask 785408  }
 0x4d2   : > { %vm4771_vm8 = vcmp.eq.s32.totalorder %v2301_v0, 0 }
 0x584   : > { %v3500_v46 = vpop.f32.mrb[24].mxu0 }
 0x585   : > { %2241 = vst.msk [vmem:[#allocation3 + $0x8] sm:$0xff] %vm1283_vm14, %v3500_v46  ;;  %v2201_v24 = vpop.f32.mrb[25].mxu0 }
 0x586   : > { %2240 = vst.msk [vmem:[#allocation3] sm:$0xff] %vm1283_vm14, %v2201_v24 }
 0x58d   : > { %v2248_v34 = vld [vmem:[#allocation3] ss:$2 sm:$0xff]  ;;  %v2256_v51 = vld [vmem:[#allocation3 + $0x1] ss:$2 sm:$0xff] }
 0x58e   : > { %v2263_v33 = vadd.f32 %v2256_v51, %v2248_v34 }
 0x590   : > { %v4678_v20 = vmul.f32 0.5, %v2263_v33 }
 0x592   : > { %2319 = vrot.lane.b32.xlu0 %v4678_v20, %s3732_s29  ;;  %v2287_v35 = vrot.slane %v4678_v20, 1  ;;  %v2275_v62 = vrot.slane %v4678_v20, 7 }
 0x594   : > { %v3503_v37 = vpop.f32.mrb[26].mxu0  ;;  %v2286_v41 = vsel %vm390_vm2, 0.0, %v2275_v62 }
 0x595   : > { %2243 = vst.msk [vmem:[#allocation3 + $0x18] sm:$0xff] %vm1283_vm14, %v3503_v37  ;;  %v2211_v9 = vpop.f32.mrb[27].mxu0  ;;  %v2307_v23 = vsel %vm4757_vm5, 0.0, %v2286_v41 }
 0x596   : > { %2242 = vst.msk [vmem:[#allocation3 + $0x10] sm:$0xff] %vm1283_vm14, %v2211_v9 }
 0x59c   : > { %v3506_v45 = vpop.f32.mrb[28].mxu0 }
 0x59d   : > { %2245 = vst.msk [vmem:[#allocation3 + $0x28] sm:$0xff] %vm1283_vm14, %v3506_v45  ;;  %v2221_v56 = vpop.f32.mrb[29].mxu0  ;;  %v2250_v49 = vld [vmem:[#allocation3 + $0x10] ss:$2 sm:$0xff]  ;;  %v2258_v59 = vld [vmem:[#allocation3 + $0x11] ss:$2 sm:$0xff] }
 0x59e   : > { %2244 = vst.msk [vmem:[#allocation3 + $0x20] sm:$0xff] %vm1283_vm14, %v2221_v56  ;;  %v2264_v6 = vadd.f32 %v2258_v59, %v2250_v49 }
 0x5a0   : > { %v4704_v60 = vmul.f32 0.5, %v2264_v6 }
 0x5a2   : > { %2321 = vrot.lane.b32.xlu1 %v4704_v60, %s3732_s29  ;;  %v2288_v50 = vrot.slane %v4704_v60, 1  ;;  %v2276_v18 = vrot.slane %v4704_v60, 7 }
 0x5a3   : > { %v3509_v8 = vpop.f32.mrb[30].mxu0 }
 0x5a4   : > { %2247 = vst.msk [vmem:[#allocation3 + $0x38] sm:$0xff] %vm1283_vm14, %v3509_v8  ;;  %v2231_v53 = vpop.f32.mrb[31].mxu0  ;;  %v2289_v26 = vsel %vm439_vm1, %v2287_v35, %v2288_v50  ;;  %v2277_v25 = vsel %vm390_vm2, %v2275_v62, %v2276_v18  ;;  %v2568_v8 = vld [vmem:[%s5152_s6 + $0x28] sm:$0xff] }
 0x5a5   : > { %2246 = vst.msk [vmem:[#allocation3 + $0x30] sm:$0xff] %vm1283_vm14, %v2231_v53  ;;  %2335 = vrot.lane.b32.xlu0 %v2289_v26, %s3734_s21  ;;  %v2252_v27 = vld [vmem:[#allocation3 + $0x20] ss:$2 sm:$0xff]  ;;  %v2260_v29 = vld [vmem:[#allocation3 + $0x21] ss:$2 sm:$0xff]  ;;  %v2569_v26 = vld [vmem:[%s5152_s6 + $0x30] sm:$0xff] }
 0x5a6   : > { %v2265_v10 = vadd.f32 %v2260_v29, %v2252_v27 }
 0x5a8   : > { %v4722_v15 = vmul.f32 0.5, %v2265_v10 }
 0x5aa   : > { %2323 = vrot.lane.b32.xlu0 %v4722_v15, %s3732_s29  ;;  %v2290_v47 = vrot.slane %v4722_v15, 1  ;;  %v2278_v43 = vrot.slane %v4722_v15, 7 }
 0x5ac   : > { %v2291_v30 = vsel %vm439_vm1, %v2288_v50, %v2290_v47  ;;  %v2254_v7 = vld [vmem:[#allocation3 + $0x30] ss:$2 sm:$0xff]  ;;  %v2262_v31 = vld [vmem:[#allocation3 + $0x31] ss:$2 sm:$0xff] }
 0x5ad   : > { %v2316_v39 = vsel %vm4727_vm12, 0.0, %v2291_v30  ;;  %v2266_v54 = vadd.f32 %v2262_v31, %v2254_v7  ;;  %v2566_v50 = vld [vmem:[%s5152_s6 + $0x18] sm:$0xff] }
 0x5ae   : > { %2337 = vrot.lane.b32.xlu1 %v2316_v39, %s3734_s21  ;;  %v3587_v62 = vpack.c.bf16 %v2566_v50, %v2565_v61 }
 0x5af   : > { %v4736_v12 = vmul.f32 0.5, %v2266_v54 }
 0x5b1   : > { %v2292_v36 = vrot.slane %v4736_v12, 1  ;;  %v2280_v19 = vrot.slane %v4736_v12, 7 }
 0x5b2   : > { %2325 = vrot.lane.b32.xlu1 %v4736_v12, %s3732_s29  ;;  %s3736_s29 = smov 32  }
 0x5b3   : > { %v2293_v42 = vsel %vm439_vm1, %v2290_v47, %v2292_v36  ;;  %v2298_v38 = vsel %vm439_vm1, %v2292_v36, 0.0  ;;  %v2281_v45 = vsel %vm390_vm2, %v2278_v43, %v2280_v19 }
 0x5b4   : > { %2339 = vrot.lane.b32.xlu0 %v2293_v42, %s3734_s21  ;;  %v2318_v58 = vsel %vm4739_vm4, 0.0, %v2298_v38 }
 0x5b6   : > { %2341 = vrot.lane.b32.xlu1 %v2318_v58, %s3734_s21 }
 0x5b8   : > { %2532 = vrot.lane.b32.xlu0 %v4678_v20, %s3735_s17  ;;  %v2279_v20 = vsel %vm390_vm2, %v2276_v18, %v2278_v43  ;;  %v2567_v18 = vld [vmem:[%s5152_s6 + $0x20] sm:$0xff] }
 0x5b9   : > { %v2309_v48 = vsel %vm4771_vm8, 0.0, %v2279_v20  ;;  %v3591_v53 = vpack.c.bf16 %v2568_v8, %v2567_v18  ;;  %v2773_v18 = vld [vmem:[%s5153_s7 + $0x18] sm:$0xff]  ;;  %v2770_v8 = vld [vmem:[%s5153_s7] sm:$0xff] }
 0x5ba   : > { %2534 = vrot.lane.b32.xlu1 %v4704_v60, %s3735_s17  ;;  %v2564_v60 = vld [vmem:[%s5152_s6 + $0x8] sm:$0xff] }
 0x5bb   : > { %v3583_v35 = vpack.c.bf16 %v2564_v60, %v2563_v40 }
 0x5bd   : > { %3584 = vmatprep.subr.bf16.mxu1 %v3583_v35 }
 0x5be   : > { %3586 = vmatpush3.bf16.msra.mxu1 %v3583_v35 }
 0x5bf   : > { %3588 = vmatprep.subr.bf16.mxu1 %v3587_v62 }
 0x5c2   : > { %3590 = vmatpush3.bf16.msra.mxu1 %v3587_v62  ;;  %v2771_v62 = vld [vmem:[%s5153_s7 + $0x8] sm:$0xff] }
 0x5c3   : > { %3592 = vmatprep.subr.bf16.mxu1 %v3591_v53 }
 0x5c6   : > { %3594 = vmatpush3.bf16.msra.mxu1 %v3591_v53  ;;  %v3601_v53 = vpack.c.bf16 %v2773_v18, %v2771_v62  ;;  %v2800_v62 = vld [vmem:[%s5153_s7 + $0xf0] sm:$0xff] }
 0x5c8   : > { %3602 = vmatprep.subr.bf16.mxu0 %v3601_v53 }
 0x604   : > { %v2320_v28 = vpop.permute.xlu0 %2319 }
 0x605   : > { %v2347_v63 = vsel %vm1283_vm14, %v2307_v23, %v2320_v28 }
 0x614   : > { %v2322_v11 = vpop.permute.xlu1 %2321 }
 0x615   : > { %v2348_v46 = vsel %vm1283_vm14, %v2277_v25, %v2322_v11  ;;  %v2570_v25 = vld [vmem:[%s5152_s6 + $0x38] sm:$0x1] }
 0x616   : > { %v3595_v29 = vpack.c.bf16 %v2570_v25, %v2569_v26  ;;  %v2772_v26 = vld [vmem:[%s5153_s7 + $0x10] sm:$0xff]  ;;  %v2775_v25 = vld [vmem:[%s5153_s7 + $0x28] sm:$0xff] }
 0x617   : > { %v2336_v14 = vpop.permute.xlu0 %2335 }
 0x618   : > { %v2351_v3 = vsel %vm2076_vm9, %v2347_v63, %v2336_v14  ;;  %3597 = vmatprep.subr.msk.bf16.mxu1 %vm4700_vm3, %v3595_v29 }
 0x619   : > { %v2355_v1 = vsel %vm2085_vm13, %v2351_v3, 1.0  ;;  %3600 = vmatpush3.bf16.msk.msra.mxu1 %vm4700_vm3, %v3595_v29  ;;  %v3603_v29 = vpack.c.bf16 %v2772_v26, %v2770_v8  ;;  %vm2768_vm3 = vcmask 916480  }
 0x61a   : > { %3518 = vmatprep.mubr.msk.f32.mxu0 %vm2363_vm7, %v2355_v1 }
 0x61c   : > { %v2324_v33 = vpop.permute.xlu0 %2323 }
 0x61d   : > { %v2349_v44 = vsel %vm1283_vm14, %v2309_v48, %v2324_v33 }
 0x620   : > { %v2338_v24 = vpop.permute.xlu1 %2337 }
 0x621   : > { %v2352_v34 = vsel %vm2076_vm9, %v2348_v46, %v2338_v24 }
 0x622   : > { %v2356_v37 = vsel %vm2085_vm13, %v2352_v34, 1.0 }
 0x623   : > { %3519 = vmatmul.mubr.msk.f32.vlgmr.msra.gmra.mrb[32].mxu0 %vm2363_vm7, %v2356_v37 }
 0x624   : > { %v2326_v9 = vpop.permute.xlu1 %2325  ;;  %3604 = vmatpush1.bf16.msra.mxu0 %v3603_v29 }
 0x625   : > { %v2350_v49 = vsel %vm1283_vm14, %v2281_v45, %v2326_v9  ;;  %vm2548_vm14 = vcmask 261120  }
 0x626   : > { %v2340_v55 = vpop.permute.xlu0 %2339 }
 0x627   : > { %v2353_v56 = vsel %vm2076_vm9, %v2349_v44, %v2340_v55 }
 0x628   : > { %v2357_v59 = vsel %vm2085_vm13, %v2353_v56, 1.0  ;;  %v2342_v57 = vpop.permute.xlu1 %2341 }
 0x629   : > { %v2354_v6 = vsel %vm2076_vm9, %v2350_v49, %v2342_v57  ;;  %3521 = vmatprep.mubr.msk.f32.mxu0 %vm2363_vm7, %v2357_v59 }
 0x62a   : > { %v2358_v16 = vsel %vm2085_vm13, %v2354_v6, 1.0  ;;  %v2533_v52 = vpop.permute.xlu0 %2532  ;;  %vm2762_vm13 = vcmask 523264  }
 0x62b   : > { %3522 = vmatmul.mubr.msk.f32.gmra.mrb[34].mxu0 %vm2363_vm7, %v2358_v16 }
 0x62c   : > { %v2535_v0 = vpop.permute.xlu1 %2534 }
 0x6f6   : > { %v3520_v27 = vpop.f32.mrb[32].mxu0 }
 0x6f7   : > { %v2465_v10 = vmax.f32 %v3520_v27, 0.0  ;;  %v2445_v17 = vpop.f32.mrb[33].mxu0  ;;  %v2777_v27 = vld [vmem:[%s5153_s7 + $0x38] sm:$0xff] }
 0x6f8   : > { %v2464_v47 = vmax.f32 %v2445_v17, 0.0  ;;  %v2774_v17 = vld [vmem:[%s5153_s7 + $0x20] sm:$0xff] }
 0x6f9   : > { %v2473_v30 = vrot.slane %v2465_v10, 7  ;;  %v2485_v7 = vrot.slane %v2465_v10, 1  ;;  %2506 = vrot.lane.b32.xlu1 %v2465_v10, %s3734_s21  ;;  %v3605_v10 = vpack.c.bf16 %v2777_v27, %v2775_v25 }
 0x6fa   : > { %v2472_v31 = vrot.slane %v2464_v47, 7  ;;  %v2484_v39 = vrot.slane %v2464_v47, 1  ;;  %2504 = vrot.lane.b32.xlu0 %v2464_v47, %s3734_s21  ;;  %v2776_v47 = vld [vmem:[%s5153_s7 + $0x30] sm:$0xff] }
 0x6fb   : > { %3606 = vmatprep.subr.bf16.mxu0 %v3605_v10  ;;  %v2803_v10 = vld [vmem:[%s5153_s7 + $0x108] sm:$0x1] }
 0x6fc   : > { %v2486_v54 = vsel %vm439_vm1, %v2484_v39, %v2485_v7  ;;  %v2474_v21 = vsel %vm390_vm2, %v2472_v31, %v2473_v30  ;;  %v2483_v43 = vsel %vm390_vm2, 0.0, %v2472_v31  ;;  %v3607_v31 = vpack.c.bf16 %v2776_v47, %v2774_v17 }
 0x6fd   : > { %v2496_v34 = vsel %vm4757_vm5, 0.0, %v2483_v43 }
 0x6fe   : > { %2520 = vrot.lane.b32.xlu0 %v2486_v54, %s3736_s29  ;;  %v3523_v36 = vpop.f32.mrb[34].mxu0  ;;  %v2778_v54 = vld [vmem:[%s5153_s7 + $0x40] sm:$0xff]  ;;  %3608 = vmatpush1.bf16.msra.mxu0 %v3607_v31 }
 0x6ff   : > { %v2467_v42 = vmax.f32 %v3523_v36, 0.0  ;;  %v2455_v38 = vpop.f32.mrb[35].mxu0  ;;  %v2783_v36 = vld [vmem:[%s5153_s7 + $0x68] sm:$0xff] }
 0x700   : > { %v2466_v58 = vmax.f32 %v2455_v38, 0.0 }
 0x701   : > { %v2477_v2 = vrot.slane %v2467_v42, 7  ;;  %v2489_v41 = vrot.slane %v2467_v42, 1  ;;  %2510 = vrot.lane.b32.xlu1 %v2467_v42, %s3734_s21  ;;  %v2785_v42 = vld [vmem:[%s5153_s7 + $0x78] sm:$0xff] }
 0x702   : > { %v2475_v32 = vrot.slane %v2466_v58, 7  ;;  %v2487_v28 = vrot.slane %v2466_v58, 1  ;;  %2508 = vrot.lane.b32.xlu0 %v2466_v58, %s3734_s21  ;;  %v3613_v58 = vpack.c.bf16 %v2785_v42, %v2783_v36 }
 0x703   : > { %v2495_v22 = vsel %vm439_vm1, %v2489_v41, 0.0 }
 0x704   : > { %v2490_v23 = vsel %vm439_vm1, %v2487_v28, %v2489_v41  ;;  %v2488_v63 = vsel %vm439_vm1, %v2485_v7, %v2487_v28  ;;  %v2478_v14 = vsel %vm390_vm2, %v2475_v32, %v2477_v2  ;;  %v2476_v1 = vsel %vm390_vm2, %v2473_v30, %v2475_v32  ;;  %v2779_v30 = vld [vmem:[%s5153_s7 + $0x48] sm:$0xff]  ;;  %v2781_v7 = vld [vmem:[%s5153_s7 + $0x58] sm:$0xff]  ;;  %v2782_v2 = vld [vmem:[%s5153_s7 + $0x60] sm:$0xff] }
 0x705   : > { %v2501_v3 = vsel %vm4727_vm12, 0.0, %v2488_v63  ;;  %v2503_v11 = vsel %vm4739_vm4, 0.0, %v2495_v22  ;;  %vm2553_vm1 = vcmask 392192   ;;  %v2498_v55 = vsel %vm4771_vm8, 0.0, %v2476_v1  ;;  %v2784_v41 = vld [vmem:[%s5153_s7 + $0x70] sm:$0xff]  ;;  %v2787_v32 = vld [vmem:[%s5153_s7 + $0x88] sm:$0xff] }
 0x706   : > { %2524 = vrot.lane.b32.xlu0 %v2490_v23, %s3736_s29  ;;  %2522 = vrot.lane.b32.xlu1 %v2501_v3, %s3736_s29  ;;  %v3609_v39 = vpack.c.bf16 %v2781_v7, %v2779_v30  ;;  %v2789_v28 = vld [vmem:[%s5153_s7 + $0x98] sm:$0xff]  ;;  %v3615_v23 = vpack.c.bf16 %v2784_v41, %v2782_v2  ;;  %v2788_v3 = vld [vmem:[%s5153_s7 + $0x90] sm:$0xff]  ;;  %vm3171_vm4 = vcmask 41984  }
 0x707   : > { %v3617_v63 = vpack.c.bf16 %v2789_v28, %v2787_v32  ;;  %v2791_v1 = vld [vmem:[%s5153_s7 + $0xa8] sm:$0xff]  ;;  %v2793_v22 = vld [vmem:[%s5153_s7 + $0xb8] sm:$0xff]  ;;  %v2802_v2 = vld [vmem:[%s5153_s7 + $0x100] sm:$0x1] }
 0x708   : > { %3610 = vmatprep.subr.bf16.mxu0 %v3609_v39  ;;  %v2902_v41 = vld [vmem:[%s5154_s8 + $0x80] sm:$0xff]  ;;  %v2903_v32 = vld [vmem:[%s5154_s8 + $0x88] sm:$0xff] }
 0x709   : > { %v2886_v28 = vld [vmem:[%s5154_s8] sm:$0xff] }
 0x70a   : > { %2536 = vrot.lane.b32.xlu0 %v4722_v15, %s3735_s17  ;;  %2526 = vrot.lane.b32.xlu1 %v2503_v11, %s3736_s29 }
 0x70e   : > { %2538 = vrot.lane.b32.xlu1 %v4736_v12, %s3735_s17 }
 0x76b   : > { %v2507_v24 = vpop.permute.xlu1 %2506 }
 0x76c   : > { %v2505_v46 = vpop.permute.xlu0 %2504  ;;  %v2545_v9 = vsel %vm2076_vm9, %v2474_v21, %v2507_v24  ;;  %v2780_v21 = vld [vmem:[%s5153_s7 + $0x50] sm:$0xff] }
 0x76d   : > { %v2544_v5 = vsel %vm2076_vm9, %v2496_v34, %v2505_v46  ;;  %v3611_v38 = vpack.c.bf16 %v2780_v21, %v2778_v54  ;;  %v2790_v34 = vld [vmem:[%s5153_s7 + $0xa0] sm:$0xff] }
 0x76f   : > { %3612 = vmatpush1.bf16.msra.mxu0 %v3611_v38 }
 0x770   : > { %v2521_v33 = vpop.permute.xlu0 %2520  ;;  %3614 = vmatprep.subr.bf16.mxu0 %v3613_v58 }
 0x771   : > { %v2549_v15 = vsel %vm2548_vm14, %v2544_v5, %v2521_v33  ;;  %v2792_v5 = vld [vmem:[%s5153_s7 + $0xb0] sm:$0xff]  ;;  %v2795_v33 = vld [vmem:[%s5153_s7 + $0xc8] sm:$0xff] }
 0x772   : > { %v2554_v12 = vsel %vm2553_vm1, %v2549_v15, %v2533_v52  ;;  %v3621_v52 = vpack.c.bf16 %v2793_v22, %v2791_v1  ;;  %v3623_v15 = vpack.c.bf16 %v2792_v5, %v2790_v34  ;;  %v3633_v1 = vpack.c.bf16 %v2903_v32, %v2902_v41  ;;  %v2906_v34 = vld [vmem:[%s5154_s8 + $0xa0] sm:$0xff]  ;;  %v2907_v5 = vld [vmem:[%s5154_s8 + $0xa8] sm:$0xff] }
 0x773   : > { %v2511_v20 = vpop.permute.xlu1 %2510  ;;  %v2559_v37 = vsel %vm2558_vm10, %v2554_v12, 1.0  ;;  %3616 = vmatpush1.bf16.msra.mxu0 %v3615_v23  ;;  %v2797_v12 = vld [vmem:[%s5153_s7 + $0xd8] sm:$0xff]  ;;  %v2887_v23 = vld [vmem:[%s5154_s8 + $0x8] sm:$0xff] }
 0x774   : > { %3540 = vmatprep.mubr.msk.f32.mxu1 %vm2571_vm11, %v2559_v37  ;;  %v2509_v19 = vpop.permute.xlu0 %2508  ;;  %v2547_v60 = vsel %vm2076_vm9, %v2478_v14, %v2511_v20  ;;  %v2786_v14 = vld [vmem:[%s5153_s7 + $0x80] sm:$0xff]  ;;  %3618 = vmatprep.subr.bf16.mxu0 %v3617_v63  ;;  %v3625_v20 = vpack.c.bf16 %v2797_v12, %v2795_v33  ;;  %v3635_v22 = vpack.c.bf16 %v2887_v23, %v2886_v28  ;;  %v2916_v23 = vld [vmem:[%s5154_s8 + $0xf0] sm:$0xff] }
 0x775   : > { %v2546_v56 = vsel %vm2076_vm9, %v2498_v55, %v2509_v19  ;;  %v3619_v11 = vpack.c.bf16 %v2788_v3, %v2786_v14  ;;  %v2794_v37 = vld [vmem:[%s5153_s7 + $0xc0] sm:$0xff]  ;;  %v2796_v19 = vld [vmem:[%s5153_s7 + $0xd0] sm:$0xff]  ;;  %v3739_v3 = vmov 1.0   ;;  %3634 = vmatprep.subr.bf16.mxu1 %v3633_v1  ;;  %v3641_v12 = vpack.c.bf16 %v2907_v5, %v2906_v34 }
 0x776   : > { %3298 = vmatprep.mubr.msk.f32.mxu0 %vm697_vm6, %v3739_v3 }
 0x777   : > { %3620 = vmatpush1.bf16.msra.mxu0 %v3619_v11  ;;  %v2904_v11 = vld [vmem:[%s5154_s8 + $0x90] sm:$0xff] }
 0x778   : > { %v2525_v4 = vpop.permute.xlu0 %2524  ;;  %v2523_v48 = vpop.permute.xlu1 %2522  ;;  %3622 = vmatprep.subr.bf16.mxu0 %v3621_v52  ;;  %v2905_v52 = vld [vmem:[%s5154_s8 + $0x98] sm:$0xff] }
 0x779   : > { %v2550_v44 = vsel %vm2548_vm14, %v2545_v9, %v2523_v48  ;;  %v2551_v59 = vsel %vm2548_vm14, %v2546_v56, %v2525_v4  ;;  %v2799_v9 = vld [vmem:[%s5153_s7 + $0xe8] sm:$0xff]  ;;  %v3627_v4 = vpack.c.bf16 %v2796_v19, %v2794_v37  ;;  %v2801_v48 = vld [vmem:[%s5153_s7 + $0xf8] sm:$0xff]  ;;  %v2908_v19 = vld [vmem:[%s5154_s8 + $0xb0] sm:$0xff] }
 0x77a   : > { %v2555_v45 = vsel %vm2553_vm1, %v2550_v44, %v2535_v0  ;;  %v2891_v37 = vld [vmem:[%s5154_s8 + $0x28] sm:$0xff] }
 0x77b   : > { %v2560_v49 = vsel %vm2558_vm10, %v2555_v45, 1.0  ;;  %3624 = vmatpush1.bf16.msra.mxu0 %v3623_v15  ;;  %v3629_v45 = vpack.c.bf16 %v2801_v48, %v2799_v9  ;;  %v2909_v9 = vld [vmem:[%s5154_s8 + $0xb8] sm:$0xff] }
 0x77c   : > { %v2537_v57 = vpop.permute.xlu0 %2536  ;;  %3541 = vmatmul.mubr.msk.f32.vlgmr.msra.gmra.mrb[16].mxu1 %vm2571_vm11, %v2560_v49  ;;  %v2527_v6 = vpop.permute.xlu1 %2526  ;;  %3626 = vmatprep.subr.bf16.mxu0 %v3625_v20  ;;  %v2890_v20 = vld [vmem:[%s5154_s8 + $0x20] sm:$0xff]  ;;  %v3645_v48 = vpack.c.bf16 %v2909_v9, %v2908_v19 }
 0x77d   : > { %v2556_v16 = vsel %vm2553_vm1, %v2551_v59, %v2537_v57  ;;  %v2552_v51 = vsel %vm2548_vm14, %v2547_v60, %v2527_v6  ;;  %3636 = vmatpush3.bf16.msra.mxu1 %v3635_v22  ;;  %v2901_v22 = vld [vmem:[%s5154_s8 + $0x78] sm:$0xff]  ;;  %v3067_v9 = vld [vmem:[%s5155_s9 + $0x20] sm:$0xff] }
 0x77e   : > { %v2561_v40 = vsel %vm2558_vm10, %v2556_v16, 1.0 }
 0x77f   : > { %3543 = vmatprep.mubr.msk.f32.mxu1 %vm2571_vm11, %v2561_v40  ;;  %3628 = vmatpush1.bf16.msra.mxu0 %v3627_v4  ;;  %v3643_v4 = vpack.c.bf16 %v2891_v37, %v2890_v20  ;;  %v3065_v20 = vld [vmem:[%s5155_s9 + $0x10] sm:$0xff]  ;;  %v3066_v37 = vld [vmem:[%s5155_s9 + $0x18] sm:$0xff] }
 0x780   : > { %v2539_v61 = vpop.permute.xlu1 %2538  ;;  %3630 = vmatprep.subr.bf16.mxu0 %v3629_v45  ;;  %v2910_v45 = vld [vmem:[%s5154_s8 + $0xc0] sm:$0xff]  ;;  %v3669_v19 = vpack.c.bf16 %v3066_v37, %v3065_v20 }
 0x781   : > { %v2557_v35 = vsel %vm2553_vm1, %v2552_v51, %v2539_v61  ;;  %v2798_v61 = vld [vmem:[%s5153_s7 + $0xe0] sm:$0xff] }
 0x782   : > { %v2562_v50 = vsel %vm2558_vm10, %v2557_v35, 1.0  ;;  %v3631_v25 = vpack.c.bf16 %v2800_v62, %v2798_v61  ;;  %v2896_v61 = vld [vmem:[%s5154_s8 + $0x50] sm:$0xff]  ;;  %v2915_v62 = vld [vmem:[%s5154_s8 + $0xe8] sm:$0xff] }
 0x783   : > { %3544 = vmatmul.mubr.msk.f32.gmra.mrb[18].mxu1 %vm2571_vm11, %v2562_v50 }
 0x784   : > { %3632 = vmatpush1.bf16.msra.mxu0 %v3631_v25 }
 0x785   : > { %3296 = vmatprep.subr.msk.mxu0 %vm390_vm2, %v2803_v10 }
 0x788   : > { %3297 = vmatpush1.msk.msra.mxu0 %vm390_vm2, %v2802_v2 }
 0x84f   : > { %v3542_v0 = vpop.f32.mrb[16].mxu1 }
 0x850   : > { %2673 = vst.msk [vmem:[#allocation4 + $0x8] sm:$0xff] %vm2076_vm9, %v3542_v0  ;;  %v2653_v43 = vpop.f32.mrb[17].mxu1  ;;  %v2888_v0 = vld [vmem:[%s5154_s8 + $0x10] sm:$0xff] }
 0x851   : > { %2672 = vst.msk [vmem:[#allocation4] sm:$0xff] %vm2076_vm9, %v2653_v43 }
 0x856   : > { %v3545_v46 = vpop.f32.mrb[18].mxu1 }
 0x857   : > { %2675 = vst.msk [vmem:[#allocation4 + $0x18] sm:$0xff] %vm2076_vm9, %v3545_v46  ;;  %v2663_v24 = vpop.f32.mrb[19].mxu1  ;;  %v3637_v46 = vpack.c.bf16 %v2905_v52, %v2904_v11  ;;  %v3742_v11 = vmov 0.0  }
 0x858   : > { %2674 = vst.msk [vmem:[#allocation4 + $0x10] sm:$0xff] %vm2076_vm9, %v2663_v24  ;;  %v2889_v24 = vld [vmem:[%s5154_s8 + $0x18] sm:$0xff]  ;;  %3546 = vmatprep.subr.mxu0 %v3742_v11 }
 0x859   : > { %v3639_v33 = vpack.c.bf16 %v2889_v24, %v2888_v0  ;;  %3638 = vmatprep.subr.bf16.mxu1 %v3637_v46  ;;  %v2918_v0 = vld [vmem:[%s5154_s8 + $0x100] sm:$0x1]  ;;  %v3064_v24 = vld [vmem:[%s5155_s9 + $0x8] sm:$0xff] }
 0x85a   : > { %v3063_v46 = vld [vmem:[%s5155_s9] sm:$0xff] }
 0x85b   : > { %3640 = vmatpush3.bf16.msra.mxu1 %v3639_v33 }
 0x85c   : > { %3642 = vmatprep.subr.bf16.mxu1 %v3641_v12 }
 0x85e   : > { %v2711_v44 = vld [vmem:[#allocation4 + $0xa] ss:$16 sm:$0x3]  ;;  %v2713_v55 = vld [vmem:[#allocation4 + $0xb] ss:$16 sm:$0x3] }
 0x85f   : > { %v2714_v56 = vadd.f32 %v2713_v55, %v2711_v44  ;;  %v2704_v49 = vld [vmem:[#allocation4 + $0x8] ss:$16 sm:$0x3]  ;;  %v2706_v59 = vld [vmem:[#allocation4 + $0x9] ss:$16 sm:$0x3]  ;;  %3644 = vmatpush3.bf16.msra.mxu1 %v3643_v4 }
 0x860   : > { %v2707_v57 = vadd.f32 %v2706_v59, %v2704_v49  ;;  %v2690_v6 = vld [vmem:[#allocation4 + $0x4] ss:$16 sm:$0x3]  ;;  %v2692_v16 = vld [vmem:[#allocation4 + $0x5] ss:$16 sm:$0x3]  ;;  %3646 = vmatprep.subr.bf16.mxu1 %v3645_v48 }
 0x861   : > { %v2715_v40 = vmul.f32 0.5, %v2714_v56  ;;  %v2693_v60 = vadd.f32 %v2692_v16, %v2690_v6  ;;  %v2683_v51 = vld [vmem:[#allocation4 + $0x2] ss:$16 sm:$0x3]  ;;  %v2893_v55 = vld [vmem:[%s5154_s8 + $0x38] sm:$0xff]  ;;  %v2911_v56 = vld [vmem:[%s5154_s8 + $0xc8] sm:$0xff] }
 0x862   : > { %v2708_v35 = vmul.f32 0.5, %v2707_v57  ;;  %v2685_v50 = vld [vmem:[#allocation4 + $0x3] ss:$16 sm:$0x3]  ;;  %v3649_v59 = vpack.c.bf16 %v2911_v56, %v2910_v45  ;;  %v2895_v6 = vld [vmem:[%s5154_s8 + $0x48] sm:$0xff] }
 0x863   : > { %v2716_v18 = vmax.f32 %v2715_v40, 0.0  ;;  %v2694_v8 = vmul.f32 0.5, %v2693_v60  ;;  %v2686_v53 = vadd.f32 %v2685_v50, %v2683_v51  ;;  %v2718_v26 = vld [vmem:[#allocation4 + $0xc] ss:$16 sm:$0x3]  ;;  %v2892_v44 = vld [vmem:[%s5154_s8 + $0x30] sm:$0xff] }
 0x864   : > { %v2709_v27 = vmax.f32 %v2708_v35, 0.0  ;;  %v2720_v29 = vld [vmem:[#allocation4 + $0xd] ss:$16 sm:$0x3]  ;;  %v3647_v49 = vpack.c.bf16 %v2893_v55, %v2892_v44  ;;  %v2894_v57 = vld [vmem:[%s5154_s8 + $0x40] sm:$0xff]  ;;  %v2912_v16 = vld [vmem:[%s5154_s8 + $0xd0] sm:$0xff] }
 0x865   : > { %2748 = vrot.lane.b32.xlu0 %v2716_v18, %s3737_s25  ;;  %v2687_v17 = vmul.f32 0.5, %v2686_v53  ;;  %v2721_v47 = vadd.f32 %v2720_v29, %v2718_v26  ;;  %v2697_v30 = vld [vmem:[#allocation4 + $0x6] ss:$16 sm:$0x3]  ;;  %v2695_v36 = vmax.f32 %v2694_v8, 0.0  ;;  %v2913_v40 = vld [vmem:[%s5154_s8 + $0xd8] sm:$0xff]  ;;  %v3651_v60 = vpack.c.bf16 %v2895_v6, %v2894_v57 }
 0x866   : > { %2744 = vrot.lane.b32.xlu1 %v2709_v27, %s3738_s26  ;;  %v2699_v7 = vld [vmem:[#allocation4 + $0x7] ss:$16 sm:$0x3]  ;;  %v2725_v31 = vld [vmem:[#allocation4 + $0xe] ss:$16 sm:$0x3]  ;;  %3648 = vmatpush3.bf16.msra.mxu1 %v3647_v49  ;;  %v3653_v51 = vpack.c.bf16 %v2913_v40, %v2912_v16 }
 0x867   : > { %v2688_v39 = vmax.f32 %v2687_v17, 0.0  ;;  %v2700_v54 = vadd.f32 %v2699_v7, %v2697_v30  ;;  %v2727_v21 = vld [vmem:[#allocation4 + $0xf] ss:$16 sm:$0x3]  ;;  %v2722_v42 = vmul.f32 0.5, %v2721_v47  ;;  %3650 = vmatprep.subr.bf16.mxu1 %v3649_v59  ;;  %v2914_v50 = vld [vmem:[%s5154_s8 + $0xe0] sm:$0xff] }
 0x868   : > { %v2728_v38 = vadd.f32 %v2727_v21, %v2725_v31  ;;  %v2897_v35 = vld [vmem:[%s5154_s8 + $0x58] sm:$0xff]  ;;  %v3657_v8 = vpack.c.bf16 %v2915_v62, %v2914_v50  ;;  %v2898_v53 = vld [vmem:[%s5154_s8 + $0x60] sm:$0xff]  ;;  %v2899_v26 = vld [vmem:[%s5154_s8 + $0x68] sm:$0xff] }
 0x869   : > { %2732 = vrot.lane.b32.xlu0 %v2688_v39, %s3734_s21  ;;  %v2701_v58 = vmul.f32 0.5, %v2700_v54  ;;  %v2723_v43 = vmax.f32 %v2722_v42, 0.0  ;;  %v3655_v18 = vpack.c.bf16 %v2897_v35, %v2896_v61  ;;  %v3659_v25 = vpack.c.bf16 %v2899_v26, %v2898_v53  ;;  %v2676_v27 = vld [vmem:[#allocation4] ss:$16 sm:$0x3]  ;;  %v3068_v4 = vld [vmem:[%s5155_s9 + $0x28] sm:$0xff] }
 0x86a   : > { %2736 = vrot.lane.b32.xlu1 %v2695_v36, %s3736_s29  ;;  %v2729_v14 = vmul.f32 0.5, %v2728_v38  ;;  %3652 = vmatpush3.bf16.msra.mxu1 %v3651_v60  ;;  %v2678_v29 = vld [vmem:[#allocation4 + $0x1] ss:$16 sm:$0x3]  ;;  %v3672_v48 = vpack.c.bf16 %v3068_v4, %v3067_v9  ;;  %v3072_v56 = vld [vmem:[%s5155_s9 + $0x48] sm:$0xff]  ;;  %v3074_v57 = vld [vmem:[%s5155_s9 + $0x58] sm:$0xff] }
 0x86b   : > { %v2702_v63 = vmax.f32 %v2701_v58, 0.0  ;;  %3654 = vmatprep.subr.bf16.mxu1 %v3653_v51  ;;  %v2679_v10 = vadd.f32 %v2678_v29, %v2676_v27  ;;  %v3069_v44 = vld [vmem:[%s5155_s9 + $0x30] sm:$0xff]  ;;  %v3071_v45 = vld [vmem:[%s5155_s9 + $0x40] sm:$0xff]  ;;  %v3076_v40 = vld [vmem:[%s5155_s9 + $0x68] sm:$0xff] }
 0x86c   : > { %v2730_v15 = vmax.f32 %v2729_v14, 0.0  ;;  %v2900_v14 = vld [vmem:[%s5154_s8 + $0x70] sm:$0xff]  ;;  %v3678_v49 = vpack.c.bf16 %v3072_v56, %v3071_v45  ;;  %v3075_v16 = vld [vmem:[%s5155_s9 + $0x60] sm:$0xff]  ;;  %v3078_v50 = vld [vmem:[%s5155_s9 + $0x78] sm:$0xff] }
 0x86d   : > { %2740 = vrot.lane.b32.xlu0 %v2702_v63, %s3735_s17  ;;  %v2680_v17 = vmul.f32 0.5, %v2679_v10  ;;  %v2917_v63 = vld [vmem:[%s5154_s8 + $0xf8] sm:$0xff]  ;;  %v3663_v52 = vpack.c.bf16 %v2901_v22, %v2900_v14  ;;  %v3073_v59 = vld [vmem:[%s5155_s9 + $0x50] sm:$0xff]  ;;  %v3684_v60 = vpack.c.bf16 %v3076_v40, %v3075_v16 }
 0x86e   : > { %2752 = vrot.lane.b32.xlu1 %v2723_v43, %s3740_s15  ;;  %3656 = vmatpush3.bf16.msra.mxu1 %v3655_v18  ;;  %v3661_v1 = vpack.c.bf16 %v2917_v63, %v2916_v23  ;;  %v3744_v43 = vmov 0.0|0.0   ;;  %v3681_v6 = vpack.c.bf16 %v3074_v57, %v3073_v59  ;;  %v3077_v35 = vld [vmem:[%s5155_s9 + $0x70] sm:$0xff]  ;;  %v3079_v18 = vld [vmem:[%s5155_s9 + $0x80] sm:$0x1] }
 0x86f   : > { %3658 = vmatprep.subr.bf16.mxu1 %v3657_v8  ;;  %v2681_v7 = vmax.f32 %v2680_v17, 0.0  ;;  %v3687_v62 = vpack.c.bf16 %v3078_v50, %v3077_v35 }
 0x871   : > { %2756 = vrot.lane.b32.xlu0 %v2730_v15, %s3741_s23  ;;  %v3666_v15 = vpack.c.bf16 %v3064_v24, %v3063_v46 }
 0x872   : > { %3660 = vmatpush3.bf16.msra.mxu1 %v3659_v25 }
 0x873   : > { %3662 = vmatprep.subr.bf16.mxu1 %v3661_v1 }
 0x876   : > { %3664 = vmatpush3.bf16.msra.mxu1 %v3663_v52 }
 0x877   : > { %3665 = vmatprep.subr.bf16.mxu1 %v3744_v43 }
 0x8d7   : > { %v2749_v47 = vpop.permute.xlu0 %2748 }
 0x8d8   : > { %v2745_v30 = vpop.permute.xlu1 %2744 }
 0x8db   : > { %v2733_v31 = vpop.permute.xlu0 %2732 }
 0x8dc   : > { %v2737_v39 = vpop.permute.xlu1 %2736  ;;  %v2759_v54 = vsel %vm2076_vm9, %v2681_v7, %v2733_v31  ;;  %vm3743_vm9 = vmmov 0  }
 0x8dd   : > { %v2760_v36 = vsel %vm2548_vm14, %v2759_v54, %v2737_v39 }
 0x8df   : > { %v2741_v21 = vpop.permute.xlu0 %2740 }
 0x8e0   : > { %v2761_v42 = vsel %vm2553_vm1, %v2760_v36, %v2741_v21  ;;  %v2753_v58 = vpop.permute.xlu1 %2752  ;;  %v3168_v21 = vand.u32 127, %v488_v13 }
 0x8e1   : > { %v2763_v38 = vsel %vm2762_vm13, %v2761_v42, %v2745_v30 }
 0x8e2   : > { %v2765_v2 = vsel %vm2764_vm15, %v2763_v38, %v2749_v47 }
 0x8e3   : > { %v2757_v41 = vpop.permute.xlu0 %2756  ;;  %v2767_v32 = vsel %vm2766_vm0, %v2765_v2, %v2753_v58 }
 0x8e4   : > { %v2769_v28 = vsel %vm2768_vm3, %v2767_v32, %v2757_v41 }
 0x8e5   : > { %2878 = vmatmul.mubr.f32.vlgmr.msra.gmra.mrb[36].mxu0 %v2769_v28 }
 0x8e6   : > { %3547 = vmatpush3.msk.msra.mxu0 %vm390_vm2, %v2918_v0  ;;  %3548 = vmatprep.mubr.msk.f32.mxu0 %vm3743_vm9, %v3742_v11 }
 0x8e9   : > { %3549 = vmatmul.mubr.msk.f32.vlgmr.msra.gmra.mrb[38].mxu0 %vm697_vm6, %v3739_v3 }
 0x9b8   : > { %v2879_v34 = vpop.f32.mrb[36].mxu0 }
 0x9b9   : > { %v2881_v5 = vpop.f32.mrb[37].mxu0  ;;  %v2884_v12 = vmax.f32 %v2879_v34, 0.0 }
 0x9ba   : > { %v2885_v33 = vmax.f32 %v2881_v5, 0.0 }
 0x9bc   : > { %2986 = vmatprep.mubr.f32.mxu1 %v2885_v33  ;;  %v3058_v51 = vpop.f32.mrb[38].mxu0 }
 0x9bd   : > { %2987 = vmatmul.mubr.f32.vlgmr.msra.gmra.mrb[20].mxu1 %v2884_v12  ;;  %v3550_v61 = vpop.f32.mrb[39].mxu0 }
 0x9be   : > { %3667 = vmatpush1.bf16.msra.mxu1 %v3666_v15  ;;  %3302 = vmatprep.mubr.msk.f32.mxu1 %vm697_vm6, %v3739_v3  ;;  %v3070_v3 = vld [vmem:[%s5155_s9 + $0x38] sm:$0xff]  ;;  %vm3169_vm6 = vcmp.lt.s32.totalorder %v3168_v21, 3 }
 0x9bf   : > { %3668 = vmatprep.subr.bf16.mxu1 %v3744_v43  ;;  %v3675_v55 = vpack.c.bf16 %v3070_v3, %v3069_v44 }
 0x9c2   : > { %3670 = vmatpush1.bf16.msra.mxu1 %v3669_v19 }
 0x9c3   : > { %3671 = vmatprep.subr.bf16.mxu1 %v3744_v43 }
 0x9c6   : > { %3673 = vmatpush1.bf16.msra.mxu1 %v3672_v48 }
 0x9c7   : > { %3674 = vmatprep.subr.bf16.mxu1 %v3744_v43 }
 0x9ca   : > { %3676 = vmatpush1.bf16.msra.mxu1 %v3675_v55 }
 0x9cb   : > { %3677 = vmatprep.subr.bf16.mxu1 %v3744_v43 }
 0x9ce   : > { %3679 = vmatpush1.bf16.msra.mxu1 %v3678_v49 }
 0x9cf   : > { %3680 = vmatprep.subr.bf16.mxu1 %v3744_v43 }
 0x9d2   : > { %3682 = vmatpush1.bf16.msra.mxu1 %v3681_v6 }
 0x9d3   : > { %3683 = vmatprep.subr.bf16.mxu1 %v3744_v43 }
 0x9d6   : > { %3685 = vmatpush1.bf16.msra.mxu1 %v3684_v60 }
 0x9d7   : > { %3686 = vmatprep.subr.bf16.mxu1 %v3744_v43 }
 0x9da   : > { %3688 = vmatpush1.bf16.msra.mxu1 %v3687_v62 }
 0x9db   : > { %3115 = vmatprep.subr.mxu1 %v3742_v11 }
 0x9de   : > { %3301 = vmatpush1.msk.msra.mxu1 %vm390_vm2, %v3079_v18 }
 0xa90   : > { %v3415_v8 = vpop.f32.mrb[20].mxu1 }
 0xa91   : > { %v3416_v53 = vpop.f32.mrb[21].mxu1 }
 0xa92   : > { %v3417_v26 = vadd.f32 %v3416_v53, %v3415_v8 }
 0xa94   : > { %v3059_v25 = vadd.f32 %v3417_v26, %v3058_v51 }
 0xa96   : > { %v3062_v27 = vmax.f32 %v3059_v25, 0.0 }
 0xa98   : > { %3148 = vmatmul.mubr.f32.vlgmr.msra.gmra.mrb[22].mxu1 %v3062_v27 }
 0xb6b   : > { %v3149_v29 = vpop.f32.mrb[22].mxu1 }
 0xb6c   : > { %v3154_v10 = vmin.f32 %v3149_v29, 20.0  ;;  %v3151_v17 = vpop.f32.mrb[23].mxu1  ;;  %vm3153_vm12 = vcmp.gt.f32.partialorder %v3149_v29, 20.0 }
 0xb6e   : > { %v3155_v47 = vmul.f32 1.442695, %v3154_v10 }
 0xb70   : > { %3715 = vpow2.f32 %v3155_v47 }
 0xb7a   : > { %v3716_v30 = vpop.eup %3715 }
 0xb7b   : > { %v3157_v7 = vadd.f32 1.0, %v3716_v30  ;;  %v3160_v31 = vmul.f32 -0.5, %v3716_v30  ;;  %v3163_v54 = vand.u32 2147483647, %v3716_v30 }
 0xb7d   : > { %3717 = vlog2.f32 %v3157_v7  ;;  %v3161_v39 = vadd.f32 1.0, %v3160_v31  ;;  %vm3164_vm2 = vcmp.lt.f32.partialorder %v3163_v54, 0.0004427343 }
 0xb7f   : > { %v3162_v38 = vmul.f32 %v3716_v30, %v3161_v39 }
 0xb87   : > { %v3718_v36 = vpop.eup %3717 }
 0xb88   : > { %v3159_v42 = vmul.f32 0.6931472, %v3718_v36 }
 0xb8a   : > { %v3165_v58 = vsel %vm3164_vm2, %v3162_v38, %v3159_v42 }
 0xb8b   : > { %v3166_v2 = vsel %vm3153_vm12, %v3149_v29, %v3165_v58 }
 0xb8c   : > { %v3170_v41 = vsel %vm3169_vm6, %v3149_v29, %v3166_v2 }
 0xb8d   : > { %3172 = vst.msk [vmem:[%s357_s27] sm:$0x3] %vm3171_vm4, %v3170_v41 }
 0xb8e PF: > { %s20_s13 = sadd.s32 1, %s3725_s13  }
 0xb8f   : > { %p17_p4 = scmp.ge.s32.totalorder %s20_s13, 4  }
 0xb91   :  { %19 = sbr.rel (!%p17_p4) target bundleno = 1 (0x1), region = 127 }

</bundles_post_ra>
